<compile_context>
chip_gen: v5e
topology: v5e:2x2
jax: 0.10.0
libtpu: 0.0.40
codegen_flags: <defaults>
</compile_context>

<pallas_src>
import functools

import jax
import jax.numpy as jnp
from jax import lax
from jax.experimental import pallas as pl
from jax.experimental.pallas import tpu as pltpu


# ----------------------------------------------------------------------------
# Kernel: one (batch, query-tile) step; all heads handled in-kernel.
#   q_ref  : (1, TQ, C)   query tile (native layout)
#   k_ref  : (1, HW, C)   full keys for this batch (resident across q tiles)
#   v_ref  : (1, HW, Cv)  full values for this batch (resident across q tiles)
#   qkp_ref: (8, C)   [gq_w*s, gq_b*s, lq_w*s, lq_b*s, gk_w, gk_b, lk_w, lk_b]
#   vp_ref : (5, Cv)  [gv_w*pw*r, gv_b*pw*r, lv_w*pw*(1-r), lv_b*pw*(1-r), proj_b]
#   o_ref  : (1, TQ, Cv)
#   scratch: kv_aff (2, HW, C) bf16 | v_cat (2*HW, Cv) bf16 | out_acc (TQ, Cv) f32
# ----------------------------------------------------------------------------
def _glsa_kernel(q_ref, k_ref, v_ref, qkp_ref, vp_ref, o_ref,
                 kv_aff_ref, v_cat_ref, out_acc_ref, *, n_heads, exp_dtype):
    hw = k_ref.shape[1]
    c = q_ref.shape[2]
    cv = v_ref.shape[2]
    d = c // n_heads
    dv = cv // n_heads

    # ---- per batch (qi == 0): affine K/V once into persistent VMEM scratch --
    @pl.when(pl.program_id(1) == 0)
    def _():
        k = k_ref[0]                                            # (HW, C)  f32
        v = v_ref[0]                                            # (HW, Cv) f32
        kv_aff_ref[0] = (k * qkp_ref[4:5, :] + qkp_ref[5:6, :]).astype(jnp.bfloat16)
        kv_aff_ref[1] = (k * qkp_ref[6:7, :] + qkp_ref[7:8, :]).astype(jnp.bfloat16)
        v_cat_ref[0:hw, :] = (v * vp_ref[0:1, :] + vp_ref[1:2, :]).astype(jnp.bfloat16)
        v_cat_ref[hw:2 * hw, :] = (v * vp_ref[2:3, :] + vp_ref[3:4, :]).astype(jnp.bfloat16)

    # ---- per q tile: affine Q (scale pre-folded into weights / biases) ------
    q = q_ref[0]                                                # (TQ, C) f32
    gq = (q * qkp_ref[0:1, :] + qkp_ref[1:2, :]).astype(jnp.bfloat16)
    lq = (q * qkp_ref[2:3, :] + qkp_ref[3:4, :]).astype(jnp.bfloat16)

    contract_last = (((1,), (1,)), ((), ()))                    # s = q @ k^T
    contract_rows = (((1,), (0,)), ((), ()))                    # o = p @ v

    # Heads: small compile-time constant -> static unroll with static lane
    # slices.  Each head's scores/probabilities feed only its own PV matmul
    # whose result goes straight to out_acc_ref (no list/concat keeping the
    # (TQ, HW)-sized intermediates live across heads).
    for h in range(n_heads):
        cq = slice(h * d, (h + 1) * d)
        cvv = slice(h * dv, (h + 1) * dv)

        s_g = lax.dot_general(gq[:, cq], kv_aff_ref[0, :, cq], contract_last,
                              preferred_element_type=jnp.float32)   # (TQ, HW)
        s_l = lax.dot_general(lq[:, cq], kv_aff_ref[1, :, cq], contract_last,
                              preferred_element_type=jnp.float32)   # (TQ, HW)

        m_g = jnp.max(s_g, axis=-1, keepdims=True)
        m_l = jnp.max(s_l, axis=-1, keepdims=True)
        # One EUP pass over both branches (bf16 on v6e/v7x, f32 on v5e).
        e = jnp.exp(jnp.concatenate([s_g - m_g, s_l - m_l],
                                    axis=-1).astype(exp_dtype))      # (TQ, 2HW)
        e_g = e[:, :hw]
        e_l = e[:, hw:]
        inv_g = pl.reciprocal(jnp.sum(e_g.astype(jnp.float32), axis=-1,
                                      keepdims=True), approx=True)
        inv_l = pl.reciprocal(jnp.sum(e_l.astype(jnp.float32), axis=-1,
                                      keepdims=True), approx=True)
        p = jnp.concatenate([e_g * inv_g.astype(e.dtype),
                             e_l * inv_l.astype(e.dtype)],
                            axis=-1).astype(jnp.bfloat16)            # (TQ, 2HW)

        # Fused global + local PV product: contraction depth 2*HW.
        acc = lax.dot_general(p, v_cat_ref[:, cvv], contract_rows,
                              preferred_element_type=jnp.float32)    # (TQ, dv)
        out_acc_ref[:, cvv] = acc

    # Single store (lane-dense for production Cv >= 128); proj bias added once.
    o_ref[0] = (out_acc_ref[...] + vp_ref[4:5, :]).astype(o_ref.dtype)


# ----------------------------------------------------------------------------
# Wrapper helpers: chip detection, VMEM budget, budget-derived q tile.
# ----------------------------------------------------------------------------
def _tpu_device_kind():
    try:
        return jax.devices()[0].device_kind.lower()
    except Exception:
        return ""


def _default_vmem_limit(kind):
    if "v7" in kind or "tpu7" in kind:
        return 48 * 1024 * 1024      # 64 MiB physical on v7x: leave headroom
    if "v5" in kind or "v6" in kind:
        return 96 * 1024 * 1024      # 128 MiB physical on v5e/v5p/v6e
    return None                      # unknown chip: keep compiler default


def _pick_q_tile(hw, c, cv, vmem_limit_bytes, exp_bytes):
    budget = int(0.8 * (vmem_limit_bytes or 32 * 1024 * 1024))
    # Resident across q tiles: raw K/V pipeline blocks (double-buffered f32)
    # plus the bf16 K/V-affine scratch.
    resident = 2 * hw * (c + cv) * 4 + 2 * hw * (c + cv) * 2
    # Live bytes per q row inside one head iteration: two f32 score tiles,
    # concatenated shifted logits (f32), exp output, bf16 probs, plus the q
    # pipeline block / q affines / output accumulator.
    per_row = hw * (8 + 8 + 2 * exp_bytes + 4) + 12 * c + 16 * cv
    avail = max(budget - resident, 0)
    candidates = [t for t in (2048, 1024, 512, 256, 128, 64, 32, 16, 8)
                  if t <= hw and hw % t == 0]
    if hw <= 2048:
        candidates.insert(0, hw)
    for t in candidates:
        if t * per_row <= avail:
            return t
    # Nothing fits the budget: smallest legal tile (may spill at extreme HW).
    # TODO(synk): KV-tile axis + online softmax needed for that regime.
    return candidates[-1] if candidates else hw


# ----------------------------------------------------------------------------
# Wrapper: parameter folding + pallas_call on the native (B, HW, C) layout.
# ----------------------------------------------------------------------------
def global_local_spatial_attention(q, k, v, params, *, n_heads=4,
                                   global_ratio=0.5, q_tile=None,
                                   vmem_limit_bytes=None, exp_bf16=None):
    B, HW, C = q.shape
    Cv = v.shape[2]
    assert C % n_heads == 0 and Cv % n_heads == 0
    scale = float(C // n_heads) ** -0.5
    r = float(global_ratio)

    # Fold scale into the q affines; fold global_ratio / (1-ratio) and proj_w
    # into the v affines (exact because softmax rows sum to 1, attention is
    # linear in V and the projection is per-channel).  proj_b added in-kernel.
    # NOTE: with approx-reciprocal / bf16 probabilities the row sums are
    # ~1 +/- 1e-3, so the folded biases pick up a tiny systematic error that
    # stays well inside the validation tolerance.
    qkp = jnp.stack([
        params["gq_w"] * scale, params["gq_b"] * scale,
        params["lq_w"] * scale, params["lq_b"] * scale,
        params["gk_w"], params["gk_b"],
        params["lk_w"], params["lk_b"]], axis=0).astype(jnp.float32)     # (8, C)
    pw = params["proj_w"]
    vp = jnp.stack([
        params["gv_w"] * pw * r, params["gv_b"] * pw * r,
        params["lv_w"] * pw * (1.0 - r), params["lv_b"] * pw * (1.0 - r),
        params["proj_b"]], axis=0).astype(jnp.float32)                   # (5, Cv)

    kind = _tpu_device_kind()
    if vmem_limit_bytes is None:
        vmem_limit_bytes = _default_vmem_limit(kind)
    if exp_bf16 is None:
        # bf16 EUP path exists on v6e / v7x only; keep f32 exp elsewhere.
        exp_bf16 = ("v6" in kind) or ("v7" in kind) or ("tpu7" in kind)
    exp_dtype = jnp.bfloat16 if exp_bf16 else jnp.float32

    if q_tile is None:
        q_tile = _pick_q_tile(HW, C, Cv, vmem_limit_bytes,
                              exp_bytes=2 if exp_bf16 else 4)
    assert HW % q_tile == 0 and (q_tile == HW or q_tile % 8 == 0)
    grid_q = HW // q_tile

    # With multiple q tiles the qi axis carries the per-batch K/V-affine
    # scratch (filled at qi == 0), so it must stay "arbitrary"; with a single
    # tile both axes are safely parallel (lets v7x split the batch axis).
    dim_sem = ("parallel", "parallel") if grid_q == 1 else ("parallel", "arbitrary")

    kernel = functools.partial(_glsa_kernel, n_heads=n_heads, exp_dtype=exp_dtype)
    compiler_params = pltpu.CompilerParams(
        dimension_semantics=dim_sem, vmem_limit_bytes=vmem_limit_bytes)

    return pl.pallas_call(
        kernel,
        out_shape=jax.ShapeDtypeStruct((B, HW, Cv), jnp.float32),
        grid_spec=pltpu.PrefetchScalarGridSpec(
            num_scalar_prefetch=0,
            grid=(B, grid_q),
            in_specs=[
                pl.BlockSpec((1, q_tile, C), lambda b, qi: (b, qi, 0)),
                pl.BlockSpec((1, HW, C), lambda b, qi: (b, 0, 0)),   # K resident over qi
                pl.BlockSpec((1, HW, Cv), lambda b, qi: (b, 0, 0)),  # V resident over qi
                pl.BlockSpec((8, C), lambda b, qi: (0, 0)),          # q/k affine params
                pl.BlockSpec((5, Cv), lambda b, qi: (0, 0)),         # v affine params
            ],
            out_specs=pl.BlockSpec((1, q_tile, Cv), lambda b, qi: (b, qi, 0)),
            scratch_shapes=[
                pltpu.VMEM((2, HW, C), jnp.bfloat16),     # [gk, lk] per batch
                pltpu.VMEM((2 * HW, Cv), jnp.bfloat16),   # [gv; lv] per batch
                pltpu.VMEM((q_tile, Cv), jnp.float32),    # per-tile head accumulator
            ]),
        compiler_params=compiler_params,
    )(q, k, v, qkp, vp)


# ----------------------------------------------------------------------------
# Pure-JAX f32 reference (mirrors the PyTorch forward exactly).
# ----------------------------------------------------------------------------
def reference(q, k, v, params, *, n_heads=4, global_ratio=0.5):
    def mc(x, w, b):                     # MainConv: depthwise 1x1 conv
        return x * w[None, None, :] + b[None, None, :]

    def heads(x, h):
        B, HW, C = x.shape
        return x.reshape(B, HW, h, C // h).transpose(0, 2, 1, 3)

    def sdp(qh, kh, vh, scale):
        s = jnp.einsum("bhnd,bhmd->bhnm", qh, kh) * scale
        p = jax.nn.softmax(s, axis=-1)
        return jnp.einsum("bhnm,bhme->bhne", p, vh)

    B, HW, C = q.shape
    Cv = v.shape[2]
    scale = (C // n_heads) ** -0.5

    gq = mc(q, params["gq_w"], params["gq_b"])
    gk = mc(k, params["gk_w"], params["gk_b"])
    gv = mc(v, params["gv_w"], params["gv_b"])
    lq = mc(q, params["lq_w"], params["lq_b"])
    lk = mc(k, params["lk_w"], params["lk_b"])
    lv = mc(v, params["lv_w"], params["lv_b"])

    g_att = sdp(heads(gq, n_heads), heads(gk, n_heads), heads(gv, n_heads), scale)
    l_att = sdp(heads(lq, n_heads), heads(lk, n_heads), heads(lv, n_heads), scale)
    g_att = g_att.transpose(0, 2, 1, 3).reshape(B, HW, Cv)
    l_att = l_att.transpose(0, 2, 1, 3).reshape(B, HW, Cv)

    combined = (1.0 - global_ratio) * l_att + global_ratio * g_att
    return mc(combined, params["proj_w"], params["proj_b"])


if __name__ == "__main__":
    # Small shapes consistent with the block: the spatial attention gets
    # q = k = concatenated multi-scale features (C_in channels) and
    # v = per-scale features (C_out channels).
    # B=2, HW=16 (4x4 spatial), C_in=64, C_out=32, 4 heads (d=16, dv=8).
    B, HW, C_in, C_out = 2, 16, 64, 32
    n_heads, global_ratio = 4, 0.5

    key = jax.random.PRNGKey(0)
    kq, kk, kv, kp = jax.random.split(key, 4)
    q = jax.random.normal(kq, (B, HW, C_in), dtype=jnp.float32)
    k = jax.random.normal(kk, (B, HW, C_in), dtype=jnp.float32)
    v = jax.random.normal(kv, (B, HW, C_out), dtype=jnp.float32)

    # Deterministic depthwise-1x1 parameters (weight ~1, small bias).
    names_c = ["gq", "gk", "lq", "lk"]    # act on C_in channels (q/k maps)
    names_v = ["gv", "lv", "proj"]        # act on C_out channels (v maps, proj)
    pkeys = jax.random.split(kp, 2 * (len(names_c) + len(names_v)))
    params, i = {}, 0
    for name in names_c:
        params[f"{name}_w"] = 1.0 + 0.1 * jax.random.normal(
            pkeys[i], (C_in,), jnp.float32); i += 1
        params[f"{name}_b"] = 0.05 * jax.random.normal(
            pkeys[i], (C_in,), jnp.float32); i += 1
    for name in names_v:
        params[f"{name}_w"] = 1.0 + 0.1 * jax.random.normal(
            pkeys[i], (C_out,), jnp.float32); i += 1
        params[f"{name}_b"] = 0.05 * jax.random.normal(
            pkeys[i], (C_out,), jnp.float32); i += 1

    out = global_local_spatial_attention(q, k, v, params, n_heads=n_heads,
                                         global_ratio=global_ratio)
    out = jax.block_until_ready(out)
    assert out.shape == (B, HW, C_out), out.shape

    ref = reference(q, k, v, params, n_heads=n_heads, global_ratio=global_ratio)
    # bf16 matmul inputs (+ bf16 exp on v6e/v7x) and approx reciprocal ->
    # compare with a relative bound.
    max_err = float(jnp.max(jnp.abs(out - ref)))
    ref_scale = float(jnp.max(jnp.abs(ref)))
    assert max_err <= 7.5e-2 * max(1.0, ref_scale), (max_err, ref_scale)

    print("KERNEL_OK")
</pallas_src>

<mosaic_0001>
module attributes {stable_mosaic.version = 11 : i64} {
  func.func @_glsa_kernel(%arg0: i32, %arg1: i32, %arg2: memref<1x16x64xf32, #tpu.memory_space<vmem>>, %arg3: memref<1x16x64xf32, #tpu.memory_space<vmem>>, %arg4: memref<1x16x32xf32, #tpu.memory_space<vmem>>, %arg5: memref<8x64xf32, #tpu.memory_space<vmem>>, %arg6: memref<5x32xf32, #tpu.memory_space<vmem>>, %arg7: memref<1x16x32xf32, #tpu.memory_space<vmem>>, %arg8: memref<2x16x64xbf16, #tpu.memory_space<vmem>>, %arg9: memref<32x32xbf16, #tpu.memory_space<vmem>>, %arg10: memref<16x32xf32, #tpu.memory_space<vmem>>) attributes {dimension_semantics = [#tpu.dimension_semantics<parallel>, #tpu.dimension_semantics<parallel>], iteration_bounds = array<i64: 2, 1>, scalar_prefetch = 0 : i64, scratch_operands = 3 : i64, tpu.core_type = #tpu.core_type<tc>, window_params = [{transform_indices = @transform_0, window_bounds = array<i64: 1, 16, 64>}, {transform_indices = @transform_1, window_bounds = array<i64: 1, 16, 64>}, {transform_indices = @transform_2, window_bounds = array<i64: 1, 16, 32>}, {pipeline_mode = #tpu.pipeline_mode<synchronous>, transform_indices = @transform_3, window_bounds = array<i64: 8, 64>}, {pipeline_mode = #tpu.pipeline_mode<synchronous>, transform_indices = @transform_4, window_bounds = array<i64: 5, 32>}, {transform_indices = @transform_5, window_bounds = array<i64: 1, 16, 32>}]} {
    %c0_i32 = arith.constant 0 : i32
    %0 = arith.cmpi eq, %arg1, %c0_i32 : i32
    %1 = arith.extui %0 : i1 to i32
    %c0_i32_0 = arith.constant 0 : i32
    %2 = arith.cmpi ne, %1, %c0_i32_0 : i32
    scf.if %2 {
      %c0_76 = arith.constant 0 : index
      %c0_77 = arith.constant 0 : index
      %c0_78 = arith.constant 0 : index
      %166 = vector.load %arg3[%c0_76, %c0_77, %c0_78] : memref<1x16x64xf32, #tpu.memory_space<vmem>>, vector<1x16x64xf32>
      %167 = vector.shape_cast %166 : vector<1x16x64xf32> to vector<16x64xf32>
      %c0_79 = arith.constant 0 : index
      %c0_80 = arith.constant 0 : index
      %c0_81 = arith.constant 0 : index
      %168 = vector.load %arg4[%c0_79, %c0_80, %c0_81] : memref<1x16x32xf32, #tpu.memory_space<vmem>>, vector<1x16x32xf32>
      %169 = vector.shape_cast %168 : vector<1x16x32xf32> to vector<16x32xf32>
      %c4_82 = arith.constant 4 : index
      %c0_83 = arith.constant 0 : index
      %170 = vector.load %arg5[%c4_82, %c0_83] : memref<8x64xf32, #tpu.memory_space<vmem>>, vector<1x64xf32>
      %171 = vector.broadcast %170 : vector<1x64xf32> to vector<16x64xf32>
      %172 = arith.mulf %167, %171 : vector<16x64xf32>
      %c5 = arith.constant 5 : index
      %c0_84 = arith.constant 0 : index
      %173 = vector.load %arg5[%c5, %c0_84] : memref<8x64xf32, #tpu.memory_space<vmem>>, vector<1x64xf32>
      %174 = vector.broadcast %173 : vector<1x64xf32> to vector<16x64xf32>
      %175 = arith.addf %172, %174 : vector<16x64xf32>
      %176 = arith.truncf %175 : vector<16x64xf32> to vector<16x64xbf16>
      %c0_85 = arith.constant 0 : index
      %c0_86 = arith.constant 0 : index
      %c0_87 = arith.constant 0 : index
      %177 = vector.load %arg8[%c0_85, %c0_86, %c0_87] : memref<2x16x64xbf16, #tpu.memory_space<vmem>>, vector<1x16x64xbf16>
      %178 = vector.shape_cast %177 : vector<1x16x64xbf16> to vector<16x64xbf16>
      %179 = vector.shape_cast %176 : vector<16x64xbf16> to vector<1x16x64xbf16>
      tpu.vector_store %arg8[%c0_85, %c0_86, %c0_87], %179 {strides = array<i32>} : memref<2x16x64xbf16, #tpu.memory_space<vmem>>, vector<1x16x64xbf16>,
      %c6 = arith.constant 6 : index
      %c0_88 = arith.constant 0 : index
      %180 = vector.load %arg5[%c6, %c0_88] : memref<8x64xf32, #tpu.memory_space<vmem>>, vector<1x64xf32>
      %181 = vector.broadcast %180 : vector<1x64xf32> to vector<16x64xf32>
      %182 = arith.mulf %167, %181 : vector<16x64xf32>
      %c7 = arith.constant 7 : index
      %c0_89 = arith.constant 0 : index
      %183 = vector.load %arg5[%c7, %c0_89] : memref<8x64xf32, #tpu.memory_space<vmem>>, vector<1x64xf32>
      %184 = vector.broadcast %183 : vector<1x64xf32> to vector<16x64xf32>
      %185 = arith.addf %182, %184 : vector<16x64xf32>
      %186 = arith.truncf %185 : vector<16x64xf32> to vector<16x64xbf16>
      %c1_90 = arith.constant 1 : index
      %c0_91 = arith.constant 0 : index
      %c0_92 = arith.constant 0 : index
      %187 = vector.load %arg8[%c1_90, %c0_91, %c0_92] : memref<2x16x64xbf16, #tpu.memory_space<vmem>>, vector<1x16x64xbf16>
      %188 = vector.shape_cast %187 : vector<1x16x64xbf16> to vector<16x64xbf16>
      %189 = vector.shape_cast %186 : vector<16x64xbf16> to vector<1x16x64xbf16>
      tpu.vector_store %arg8[%c1_90, %c0_91, %c0_92], %189 {strides = array<i32>} : memref<2x16x64xbf16, #tpu.memory_space<vmem>>, vector<1x16x64xbf16>,
      %c0_93 = arith.constant 0 : index
      %c0_94 = arith.constant 0 : index
      %190 = vector.load %arg6[%c0_93, %c0_94] : memref<5x32xf32, #tpu.memory_space<vmem>>, vector<1x32xf32>
      %191 = vector.broadcast %190 : vector<1x32xf32> to vector<16x32xf32>
      %192 = arith.mulf %169, %191 : vector<16x32xf32>
      %c1_95 = arith.constant 1 : index
      %c0_96 = arith.constant 0 : index
      %193 = vector.load %arg6[%c1_95, %c0_96] : memref<5x32xf32, #tpu.memory_space<vmem>>, vector<1x32xf32>
      %194 = vector.broadcast %193 : vector<1x32xf32> to vector<16x32xf32>
      %195 = arith.addf %192, %194 : vector<16x32xf32>
      %196 = arith.truncf %195 : vector<16x32xf32> to vector<16x32xbf16>
      %c0_97 = arith.constant 0 : index
      %c0_98 = arith.constant 0 : index
      %197 = vector.load %arg9[%c0_97, %c0_98] : memref<32x32xbf16, #tpu.memory_space<vmem>>, vector<16x32xbf16>
      tpu.vector_store %arg9[%c0_97, %c0_98], %196 {strides = array<i32>} : memref<32x32xbf16, #tpu.memory_space<vmem>>, vector<16x32xbf16>,
      %c2_99 = arith.constant 2 : index
      %c0_100 = arith.constant 0 : index
      %198 = vector.load %arg6[%c2_99, %c0_100] : memref<5x32xf32, #tpu.memory_space<vmem>>, vector<1x32xf32>
      %199 = vector.broadcast %198 : vector<1x32xf32> to vector<16x32xf32>
      %200 = arith.mulf %169, %199 : vector<16x32xf32>
      %c3_101 = arith.constant 3 : index
      %c0_102 = arith.constant 0 : index
      %201 = vector.load %arg6[%c3_101, %c0_102] : memref<5x32xf32, #tpu.memory_space<vmem>>, vector<1x32xf32>
      %202 = vector.broadcast %201 : vector<1x32xf32> to vector<16x32xf32>
      %203 = arith.addf %200, %202 : vector<16x32xf32>
      %204 = arith.truncf %203 : vector<16x32xf32> to vector<16x32xbf16>
      %c16_103 = arith.constant 16 : index
      %c0_104 = arith.constant 0 : index
      %205 = vector.load %arg9[%c16_103, %c0_104] : memref<32x32xbf16, #tpu.memory_space<vmem>>, vector<16x32xbf16>
      tpu.vector_store %arg9[%c16_103, %c0_104], %204 {strides = array<i32>} : memref<32x32xbf16, #tpu.memory_space<vmem>>, vector<16x32xbf16>,
    } else {
    }
    %c0 = arith.constant 0 : index
    %c0_1 = arith.constant 0 : index
    %c0_2 = arith.constant 0 : index
    %3 = vector.load %arg2[%c0, %c0_1, %c0_2] : memref<1x16x64xf32, #tpu.memory_space<vmem>>, vector<1x16x64xf32>
    %4 = vector.shape_cast %3 : vector<1x16x64xf32> to vector<16x64xf32>
    %c0_3 = arith.constant 0 : index
    %c0_4 = arith.constant 0 : index
    %5 = vector.load %arg5[%c0_3, %c0_4] : memref<8x64xf32, #tpu.memory_space<vmem>>, vector<1x64xf32>
    %6 = vector.broadcast %5 : vector<1x64xf32> to vector<16x64xf32>
    %7 = arith.mulf %4, %6 : vector<16x64xf32>
    %c1 = arith.constant 1 : index
    %c0_5 = arith.constant 0 : index
    %8 = vector.load %arg5[%c1, %c0_5] : memref<8x64xf32, #tpu.memory_space<vmem>>, vector<1x64xf32>
    %9 = vector.broadcast %8 : vector<1x64xf32> to vector<16x64xf32>
    %10 = arith.addf %7, %9 : vector<16x64xf32>
    %11 = arith.truncf %10 : vector<16x64xf32> to vector<16x64xbf16>
    %c2 = arith.constant 2 : index
    %c0_6 = arith.constant 0 : index
    %12 = vector.load %arg5[%c2, %c0_6] : memref<8x64xf32, #tpu.memory_space<vmem>>, vector<1x64xf32>
    %13 = vector.broadcast %12 : vector<1x64xf32> to vector<16x64xf32>
    %14 = arith.mulf %4, %13 : vector<16x64xf32>
    %c3 = arith.constant 3 : index
    %c0_7 = arith.constant 0 : index
    %15 = vector.load %arg5[%c3, %c0_7] : memref<8x64xf32, #tpu.memory_space<vmem>>, vector<1x64xf32>
    %16 = vector.broadcast %15 : vector<1x64xf32> to vector<16x64xf32>
    %17 = arith.addf %14, %16 : vector<16x64xf32>
    %18 = arith.truncf %17 : vector<16x64xf32> to vector<16x64xbf16>
    %19 = vector.extract_strided_slice %11 {offsets = [0, 0], sizes = [16, 16], strides = [1, 1]} : vector<16x64xbf16> to vector<16x16xbf16>
    %c0_8 = arith.constant 0 : index
    %c0_9 = arith.constant 0 : index
    %c0_10 = arith.constant 0 : index
    %20 = vector.load %arg8[%c0_8, %c0_9, %c0_10] : memref<2x16x64xbf16, #tpu.memory_space<vmem>>, vector<1x16x16xbf16>
    %21 = vector.shape_cast %20 : vector<1x16x16xbf16> to vector<16x16xbf16>
    %cst = arith.constant dense<0.000000e+00> : vector<16x16xf32>
    %22 = tpu.matmul %19, %21, %cst {dimension_numbers = #tpu.dot_dimension_numbers<[1], [1], [0], [0], [0, 0, 1, 0], [], []>} : vector<16x16xbf16>, vector<16x16xbf16>, vector<16x16xf32> -> vector<16x16xf32>
    %23 = vector.extract_strided_slice %18 {offsets = [0, 0], sizes = [16, 16], strides = [1, 1]} : vector<16x64xbf16> to vector<16x16xbf16>
    %c1_11 = arith.constant 1 : index
    %c0_12 = arith.constant 0 : index
    %c0_13 = arith.constant 0 : index
    %24 = vector.load %arg8[%c1_11, %c0_12, %c0_13] : memref<2x16x64xbf16, #tpu.memory_space<vmem>>, vector<1x16x16xbf16>
    %25 = vector.shape_cast %24 : vector<1x16x16xbf16> to vector<16x16xbf16>
    %cst_14 = arith.constant dense<0.000000e+00> : vector<16x16xf32>
    %26 = tpu.matmul %23, %25, %cst_14 {dimension_numbers = #tpu.dot_dimension_numbers<[1], [1], [0], [0], [0, 0, 1, 0], [], []>} : vector<16x16xbf16>, vector<16x16xbf16>, vector<16x16xf32> -> vector<16x16xf32>
    %cst_15 = arith.constant dense<0xFF800000> : vector<16xf32>
    %27 = vector.multi_reduction <maximumf>, %22, %cst_15 [1] : vector<16x16xf32> to vector<16xf32>
    %28 = vector.shape_cast %27 : vector<16xf32> to vector<16x1xf32>
    %cst_16 = arith.constant dense<0xFF800000> : vector<16xf32>
    %29 = vector.multi_reduction <maximumf>, %26, %cst_16 [1] : vector<16x16xf32> to vector<16xf32>
    %30 = vector.shape_cast %29 : vector<16xf32> to vector<16x1xf32>
    %31 = vector.broadcast %28 : vector<16x1xf32> to vector<16x16xf32>
    %32 = arith.subf %22, %31 : vector<16x16xf32>
    %33 = vector.broadcast %30 : vector<16x1xf32> to vector<16x16xf32>
    %34 = arith.subf %26, %33 : vector<16x16xf32>
    %35 = tpu.concatenate %32, %34 in 1 : vector<16x16xf32>, vector<16x16xf32> -> vector<16x32xf32>
    %36 = math.exp %35 : vector<16x32xf32>
    %37 = vector.extract_strided_slice %36 {offsets = [0, 0], sizes = [16, 16], strides = [1, 1]} : vector<16x32xf32> to vector<16x16xf32>
    %38 = vector.extract_strided_slice %36 {offsets = [0, 16], sizes = [16, 16], strides = [1, 1]} : vector<16x32xf32> to vector<16x16xf32>
    %cst_17 = arith.constant dense<0.000000e+00> : vector<16xf32>
    %39 = vector.multi_reduction <add>, %37, %cst_17 [1] : vector<16x16xf32> to vector<16xf32>
    %40 = vector.shape_cast %39 : vector<16xf32> to vector<16x1xf32>
    %41 = tpu.reciprocal %40 {approx = true} : vector<16x1xf32> -> vector<16x1xf32>
    %cst_18 = arith.constant dense<0.000000e+00> : vector<16xf32>
    %42 = vector.multi_reduction <add>, %38, %cst_18 [1] : vector<16x16xf32> to vector<16xf32>
    %43 = vector.shape_cast %42 : vector<16xf32> to vector<16x1xf32>
    %44 = tpu.reciprocal %43 {approx = true} : vector<16x1xf32> -> vector<16x1xf32>
    %45 = vector.broadcast %41 : vector<16x1xf32> to vector<16x16xf32>
    %46 = arith.mulf %37, %45 : vector<16x16xf32>
    %47 = vector.broadcast %44 : vector<16x1xf32> to vector<16x16xf32>
    %48 = arith.mulf %38, %47 : vector<16x16xf32>
    %49 = tpu.concatenate %46, %48 in 1 : vector<16x16xf32>, vector<16x16xf32> -> vector<16x32xf32>
    %50 = arith.truncf %49 : vector<16x32xf32> to vector<16x32xbf16>
    %c0_19 = arith.constant 0 : index
    %c0_20 = arith.constant 0 : index
    %51 = vector.load %arg9[%c0_19, %c0_20] : memref<32x32xbf16, #tpu.memory_space<vmem>>, vector<32x8xbf16>
    %cst_21 = arith.constant dense<0.000000e+00> : vector<16x8xf32>
    %52 = tpu.matmul %50, %51, %cst_21 {dimension_numbers = #tpu.dot_dimension_numbers<[1], [0], [0], [1], [0, 0, 1, 1], [], []>} : vector<16x32xbf16>, vector<32x8xbf16>, vector<16x8xf32> -> vector<16x8xf32>
    %c0_22 = arith.constant 0 : index
    %c0_23 = arith.constant 0 : index
    %53 = vector.load %arg10[%c0_22, %c0_23] : memref<16x32xf32, #tpu.memory_space<vmem>>, vector<16x8xf32>
    tpu.vector_store %arg10[%c0_22, %c0_23], %52 {strides = array<i32>} : memref<16x32xf32, #tpu.memory_space<vmem>>, vector<16x8xf32>,
    %54 = vector.extract_strided_slice %11 {offsets = [0, 16], sizes = [16, 16], strides = [1, 1]} : vector<16x64xbf16> to vector<16x16xbf16>
    %c0_24 = arith.constant 0 : index
    %c0_25 = arith.constant 0 : index
    %c16 = arith.constant 16 : index
    %55 = vector.load %arg8[%c0_24, %c0_25, %c16] : memref<2x16x64xbf16, #tpu.memory_space<vmem>>, vector<1x16x16xbf16>
    %56 = vector.shape_cast %55 : vector<1x16x16xbf16> to vector<16x16xbf16>
    %cst_26 = arith.constant dense<0.000000e+00> : vector<16x16xf32>
    %57 = tpu.matmul %54, %56, %cst_26 {dimension_numbers = #tpu.dot_dimension_numbers<[1], [1], [0], [0], [0, 0, 1, 0], [], []>} : vector<16x16xbf16>, vector<16x16xbf16>, vector<16x16xf32> -> vector<16x16xf32>
    %58 = vector.extract_strided_slice %18 {offsets = [0, 16], sizes = [16, 16], strides = [1, 1]} : vector<16x64xbf16> to vector<16x16xbf16>
    %c1_27 = arith.constant 1 : index
    %c0_28 = arith.constant 0 : index
    %c16_29 = arith.constant 16 : index
    %59 = vector.load %arg8[%c1_27, %c0_28, %c16_29] : memref<2x16x64xbf16, #tpu.memory_space<vmem>>, vector<1x16x16xbf16>
    %60 = vector.shape_cast %59 : vector<1x16x16xbf16> to vector<16x16xbf16>
    %cst_30 = arith.constant dense<0.000000e+00> : vector<16x16xf32>
    %61 = tpu.matmul %58, %60, %cst_30 {dimension_numbers = #tpu.dot_dimension_numbers<[1], [1], [0], [0], [0, 0, 1, 0], [], []>} : vector<16x16xbf16>, vector<16x16xbf16>, vector<16x16xf32> -> vector<16x16xf32>
    %cst_31 = arith.constant dense<0xFF800000> : vector<16xf32>
    %62 = vector.multi_reduction <maximumf>, %57, %cst_31 [1] : vector<16x16xf32> to vector<16xf32>
    %63 = vector.shape_cast %62 : vector<16xf32> to vector<16x1xf32>
    %cst_32 = arith.constant dense<0xFF800000> : vector<16xf32>
    %64 = vector.multi_reduction <maximumf>, %61, %cst_32 [1] : vector<16x16xf32> to vector<16xf32>
    %65 = vector.shape_cast %64 : vector<16xf32> to vector<16x1xf32>
    %66 = vector.broadcast %63 : vector<16x1xf32> to vector<16x16xf32>
    %67 = arith.subf %57, %66 : vector<16x16xf32>
    %68 = vector.broadcast %65 : vector<16x1xf32> to vector<16x16xf32>
    %69 = arith.subf %61, %68 : vector<16x16xf32>
    %70 = tpu.concatenate %67, %69 in 1 : vector<16x16xf32>, vector<16x16xf32> -> vector<16x32xf32>
    %71 = math.exp %70 : vector<16x32xf32>
    %72 = vector.extract_strided_slice %71 {offsets = [0, 0], sizes = [16, 16], strides = [1, 1]} : vector<16x32xf32> to vector<16x16xf32>
    %73 = vector.extract_strided_slice %71 {offsets = [0, 16], sizes = [16, 16], strides = [1, 1]} : vector<16x32xf32> to vector<16x16xf32>
    %cst_33 = arith.constant dense<0.000000e+00> : vector<16xf32>
    %74 = vector.multi_reduction <add>, %72, %cst_33 [1] : vector<16x16xf32> to vector<16xf32>
    %75 = vector.shape_cast %74 : vector<16xf32> to vector<16x1xf32>
    %76 = tpu.reciprocal %75 {approx = true} : vector<16x1xf32> -> vector<16x1xf32>
    %cst_34 = arith.constant dense<0.000000e+00> : vector<16xf32>
    %77 = vector.multi_reduction <add>, %73, %cst_34 [1] : vector<16x16xf32> to vector<16xf32>
    %78 = vector.shape_cast %77 : vector<16xf32> to vector<16x1xf32>
    %79 = tpu.reciprocal %78 {approx = true} : vector<16x1xf32> -> vector<16x1xf32>
    %80 = vector.broadcast %76 : vector<16x1xf32> to vector<16x16xf32>
    %81 = arith.mulf %72, %80 : vector<16x16xf32>
    %82 = vector.broadcast %79 : vector<16x1xf32> to vector<16x16xf32>
    %83 = arith.mulf %73, %82 : vector<16x16xf32>
    %84 = tpu.concatenate %81, %83 in 1 : vector<16x16xf32>, vector<16x16xf32> -> vector<16x32xf32>
    %85 = arith.truncf %84 : vector<16x32xf32> to vector<16x32xbf16>
    %c0_35 = arith.constant 0 : index
    %c8 = arith.constant 8 : index
    %86 = vector.load %arg9[%c0_35, %c8] : memref<32x32xbf16, #tpu.memory_space<vmem>>, vector<32x8xbf16>
    %cst_36 = arith.constant dense<0.000000e+00> : vector<16x8xf32>
    %87 = tpu.matmul %85, %86, %cst_36 {dimension_numbers = #tpu.dot_dimension_numbers<[1], [0], [0], [1], [0, 0, 1, 1], [], []>} : vector<16x32xbf16>, vector<32x8xbf16>, vector<16x8xf32> -> vector<16x8xf32>
    %c0_37 = arith.constant 0 : index
    %c8_38 = arith.constant 8 : index
    %88 = vector.load %arg10[%c0_37, %c8_38] : memref<16x32xf32, #tpu.memory_space<vmem>>, vector<16x8xf32>
    tpu.vector_store %arg10[%c0_37, %c8_38], %87 {strides = array<i32>} : memref<16x32xf32, #tpu.memory_space<vmem>>, vector<16x8xf32>,
    %89 = vector.extract_strided_slice %11 {offsets = [0, 32], sizes = [16, 16], strides = [1, 1]} : vector<16x64xbf16> to vector<16x16xbf16>
    %c0_39 = arith.constant 0 : index
    %c0_40 = arith.constant 0 : index
    %c32 = arith.constant 32 : index
    %90 = vector.load %arg8[%c0_39, %c0_40, %c32] : memref<2x16x64xbf16, #tpu.memory_space<vmem>>, vector<1x16x16xbf16>
    %91 = vector.shape_cast %90 : vector<1x16x16xbf16> to vector<16x16xbf16>
    %cst_41 = arith.constant dense<0.000000e+00> : vector<16x16xf32>
    %92 = tpu.matmul %89, %91, %cst_41 {dimension_numbers = #tpu.dot_dimension_numbers<[1], [1], [0], [0], [0, 0, 1, 0], [], []>} : vector<16x16xbf16>, vector<16x16xbf16>, vector<16x16xf32> -> vector<16x16xf32>
    %93 = vector.extract_strided_slice %18 {offsets = [0, 32], sizes = [16, 16], strides = [1, 1]} : vector<16x64xbf16> to vector<16x16xbf16>
    %c1_42 = arith.constant 1 : index
    %c0_43 = arith.constant 0 : index
    %c32_44 = arith.constant 32 : index
    %94 = vector.load %arg8[%c1_42, %c0_43, %c32_44] : memref<2x16x64xbf16, #tpu.memory_space<vmem>>, vector<1x16x16xbf16>
    %95 = vector.shape_cast %94 : vector<1x16x16xbf16> to vector<16x16xbf16>
    %cst_45 = arith.constant dense<0.000000e+00> : vector<16x16xf32>
    %96 = tpu.matmul %93, %95, %cst_45 {dimension_numbers = #tpu.dot_dimension_numbers<[1], [1], [0], [0], [0, 0, 1, 0], [], []>} : vector<16x16xbf16>, vector<16x16xbf16>, vector<16x16xf32> -> vector<16x16xf32>
    %cst_46 = arith.constant dense<0xFF800000> : vector<16xf32>
    %97 = vector.multi_reduction <maximumf>, %92, %cst_46 [1] : vector<16x16xf32> to vector<16xf32>
    %98 = vector.shape_cast %97 : vector<16xf32> to vector<16x1xf32>
    %cst_47 = arith.constant dense<0xFF800000> : vector<16xf32>
    %99 = vector.multi_reduction <maximumf>, %96, %cst_47 [1] : vector<16x16xf32> to vector<16xf32>
    %100 = vector.shape_cast %99 : vector<16xf32> to vector<16x1xf32>
    %101 = vector.broadcast %98 : vector<16x1xf32> to vector<16x16xf32>
    %102 = arith.subf %92, %101 : vector<16x16xf32>
    %103 = vector.broadcast %100 : vector<16x1xf32> to vector<16x16xf32>
    %104 = arith.subf %96, %103 : vector<16x16xf32>
    %105 = tpu.concatenate %102, %104 in 1 : vector<16x16xf32>, vector<16x16xf32> -> vector<16x32xf32>
    %106 = math.exp %105 : vector<16x32xf32>
    %107 = vector.extract_strided_slice %106 {offsets = [0, 0], sizes = [16, 16], strides = [1, 1]} : vector<16x32xf32> to vector<16x16xf32>
    %108 = vector.extract_strided_slice %106 {offsets = [0, 16], sizes = [16, 16], strides = [1, 1]} : vector<16x32xf32> to vector<16x16xf32>
    %cst_48 = arith.constant dense<0.000000e+00> : vector<16xf32>
    %109 = vector.multi_reduction <add>, %107, %cst_48 [1] : vector<16x16xf32> to vector<16xf32>
    %110 = vector.shape_cast %109 : vector<16xf32> to vector<16x1xf32>
    %111 = tpu.reciprocal %110 {approx = true} : vector<16x1xf32> -> vector<16x1xf32>
    %cst_49 = arith.constant dense<0.000000e+00> : vector<16xf32>
    %112 = vector.multi_reduction <add>, %108, %cst_49 [1] : vector<16x16xf32> to vector<16xf32>
    %113 = vector.shape_cast %112 : vector<16xf32> to vector<16x1xf32>
    %114 = tpu.reciprocal %113 {approx = true} : vector<16x1xf32> -> vector<16x1xf32>
    %115 = vector.broadcast %111 : vector<16x1xf32> to vector<16x16xf32>
    %116 = arith.mulf %107, %115 : vector<16x16xf32>
    %117 = vector.broadcast %114 : vector<16x1xf32> to vector<16x16xf32>
    %118 = arith.mulf %108, %117 : vector<16x16xf32>
    %119 = tpu.concatenate %116, %118 in 1 : vector<16x16xf32>, vector<16x16xf32> -> vector<16x32xf32>
    %120 = arith.truncf %119 : vector<16x32xf32> to vector<16x32xbf16>
    %c0_50 = arith.constant 0 : index
    %c16_51 = arith.constant 16 : index
    %121 = vector.load %arg9[%c0_50, %c16_51] : memref<32x32xbf16, #tpu.memory_space<vmem>>, vector<32x8xbf16>
    %cst_52 = arith.constant dense<0.000000e+00> : vector<16x8xf32>
    %122 = tpu.matmul %120, %121, %cst_52 {dimension_numbers = #tpu.dot_dimension_numbers<[1], [0], [0], [1], [0, 0, 1, 1], [], []>} : vector<16x32xbf16>, vector<32x8xbf16>, vector<16x8xf32> -> vector<16x8xf32>
    %c0_53 = arith.constant 0 : index
    %c16_54 = arith.constant 16 : index
    %123 = vector.load %arg10[%c0_53, %c16_54] : memref<16x32xf32, #tpu.memory_space<vmem>>, vector<16x8xf32>
    tpu.vector_store %arg10[%c0_53, %c16_54], %122 {strides = array<i32>} : memref<16x32xf32, #tpu.memory_space<vmem>>, vector<16x8xf32>,
    %124 = vector.extract_strided_slice %11 {offsets = [0, 48], sizes = [16, 16], strides = [1, 1]} : vector<16x64xbf16> to vector<16x16xbf16>
    %c0_55 = arith.constant 0 : index
    %c0_56 = arith.constant 0 : index
    %c48 = arith.constant 48 : index
    %125 = vector.load %arg8[%c0_55, %c0_56, %c48] : memref<2x16x64xbf16, #tpu.memory_space<vmem>>, vector<1x16x16xbf16>
    %126 = vector.shape_cast %125 : vector<1x16x16xbf16> to vector<16x16xbf16>
    %cst_57 = arith.constant dense<0.000000e+00> : vector<16x16xf32>
    %127 = tpu.matmul %124, %126, %cst_57 {dimension_numbers = #tpu.dot_dimension_numbers<[1], [1], [0], [0], [0, 0, 1, 0], [], []>} : vector<16x16xbf16>, vector<16x16xbf16>, vector<16x16xf32> -> vector<16x16xf32>
    %128 = vector.extract_strided_slice %18 {offsets = [0, 48], sizes = [16, 16], strides = [1, 1]} : vector<16x64xbf16> to vector<16x16xbf16>
    %c1_58 = arith.constant 1 : index
    %c0_59 = arith.constant 0 : index
    %c48_60 = arith.constant 48 : index
    %129 = vector.load %arg8[%c1_58, %c0_59, %c48_60] : memref<2x16x64xbf16, #tpu.memory_space<vmem>>, vector<1x16x16xbf16>
    %130 = vector.shape_cast %129 : vector<1x16x16xbf16> to vector<16x16xbf16>
    %cst_61 = arith.constant dense<0.000000e+00> : vector<16x16xf32>
    %131 = tpu.matmul %128, %130, %cst_61 {dimension_numbers = #tpu.dot_dimension_numbers<[1], [1], [0], [0], [0, 0, 1, 0], [], []>} : vector<16x16xbf16>, vector<16x16xbf16>, vector<16x16xf32> -> vector<16x16xf32>
    %cst_62 = arith.constant dense<0xFF800000> : vector<16xf32>
    %132 = vector.multi_reduction <maximumf>, %127, %cst_62 [1] : vector<16x16xf32> to vector<16xf32>
    %133 = vector.shape_cast %132 : vector<16xf32> to vector<16x1xf32>
    %cst_63 = arith.constant dense<0xFF800000> : vector<16xf32>
    %134 = vector.multi_reduction <maximumf>, %131, %cst_63 [1] : vector<16x16xf32> to vector<16xf32>
    %135 = vector.shape_cast %134 : vector<16xf32> to vector<16x1xf32>
    %136 = vector.broadcast %133 : vector<16x1xf32> to vector<16x16xf32>
    %137 = arith.subf %127, %136 : vector<16x16xf32>
    %138 = vector.broadcast %135 : vector<16x1xf32> to vector<16x16xf32>
    %139 = arith.subf %131, %138 : vector<16x16xf32>
    %140 = tpu.concatenate %137, %139 in 1 : vector<16x16xf32>, vector<16x16xf32> -> vector<16x32xf32>
    %141 = math.exp %140 : vector<16x32xf32>
    %142 = vector.extract_strided_slice %141 {offsets = [0, 0], sizes = [16, 16], strides = [1, 1]} : vector<16x32xf32> to vector<16x16xf32>
    %143 = vector.extract_strided_slice %141 {offsets = [0, 16], sizes = [16, 16], strides = [1, 1]} : vector<16x32xf32> to vector<16x16xf32>
    %cst_64 = arith.constant dense<0.000000e+00> : vector<16xf32>
    %144 = vector.multi_reduction <add>, %142, %cst_64 [1] : vector<16x16xf32> to vector<16xf32>
    %145 = vector.shape_cast %144 : vector<16xf32> to vector<16x1xf32>
    %146 = tpu.reciprocal %145 {approx = true} : vector<16x1xf32> -> vector<16x1xf32>
    %cst_65 = arith.constant dense<0.000000e+00> : vector<16xf32>
    %147 = vector.multi_reduction <add>, %143, %cst_65 [1] : vector<16x16xf32> to vector<16xf32>
    %148 = vector.shape_cast %147 : vector<16xf32> to vector<16x1xf32>
    %149 = tpu.reciprocal %148 {approx = true} : vector<16x1xf32> -> vector<16x1xf32>
    %150 = vector.broadcast %146 : vector<16x1xf32> to vector<16x16xf32>
    %151 = arith.mulf %142, %150 : vector<16x16xf32>
    %152 = vector.broadcast %149 : vector<16x1xf32> to vector<16x16xf32>
    %153 = arith.mulf %143, %152 : vector<16x16xf32>
    %154 = tpu.concatenate %151, %153 in 1 : vector<16x16xf32>, vector<16x16xf32> -> vector<16x32xf32>
    %155 = arith.truncf %154 : vector<16x32xf32> to vector<16x32xbf16>
    %c0_66 = arith.constant 0 : index
    %c24 = arith.constant 24 : index
    %156 = vector.load %arg9[%c0_66, %c24] : memref<32x32xbf16, #tpu.memory_space<vmem>>, vector<32x8xbf16>
    %cst_67 = arith.constant dense<0.000000e+00> : vector<16x8xf32>
    %157 = tpu.matmul %155, %156, %cst_67 {dimension_numbers = #tpu.dot_dimension_numbers<[1], [0], [0], [1], [0, 0, 1, 1], [], []>} : vector<16x32xbf16>, vector<32x8xbf16>, vector<16x8xf32> -> vector<16x8xf32>
    %c0_68 = arith.constant 0 : index
    %c24_69 = arith.constant 24 : index
    %158 = vector.load %arg10[%c0_68, %c24_69] : memref<16x32xf32, #tpu.memory_space<vmem>>, vector<16x8xf32>
    tpu.vector_store %arg10[%c0_68, %c24_69], %157 {strides = array<i32>} : memref<16x32xf32, #tpu.memory_space<vmem>>, vector<16x8xf32>,
    %c0_70 = arith.constant 0 : index
    %c0_71 = arith.constant 0 : index
    %159 = vector.load %arg10[%c0_70, %c0_71] : memref<16x32xf32, #tpu.memory_space<vmem>>, vector<16x32xf32>
    %c4 = arith.constant 4 : index
    %c0_72 = arith.constant 0 : index
    %160 = vector.load %arg6[%c4, %c0_72] : memref<5x32xf32, #tpu.memory_space<vmem>>, vector<1x32xf32>
    %161 = vector.broadcast %160 : vector<1x32xf32> to vector<16x32xf32>
    %162 = arith.addf %159, %161 : vector<16x32xf32>
    %c0_73 = arith.constant 0 : index
    %c0_74 = arith.constant 0 : index
    %c0_75 = arith.constant 0 : index
    %163 = vector.load %arg7[%c0_73, %c0_74, %c0_75] : memref<1x16x32xf32, #tpu.memory_space<vmem>>, vector<1x16x32xf32>
    %164 = vector.shape_cast %163 : vector<1x16x32xf32> to vector<16x32xf32>
    %165 = vector.shape_cast %162 : vector<16x32xf32> to vector<1x16x32xf32>
    tpu.vector_store %arg7[%c0_73, %c0_74, %c0_75], %165 {strides = array<i32>} : memref<1x16x32xf32, #tpu.memory_space<vmem>>, vector<1x16x32xf32>,
    return
  }
  func.func @transform_0(%arg0: i32, %arg1: i32) -> (i32, i32, i32) {
    %c0_i32 = arith.constant 0 : i32
    %c0_i32_0 = arith.constant 0 : i32
    return %arg0, %arg1, %c0_i32 : i32, i32, i32
  }
  func.func @transform_1(%arg0: i32, %arg1: i32) -> (i32, i32, i32) {
    %c0_i32 = arith.constant 0 : i32
    %c0_i32_0 = arith.constant 0 : i32
    %c0_i32_1 = arith.constant 0 : i32
    return %arg0, %c0_i32, %c0_i32_0 : i32, i32, i32
  }
  func.func @transform_2(%arg0: i32, %arg1: i32) -> (i32, i32, i32) {
    %c0_i32 = arith.constant 0 : i32
    %c0_i32_0 = arith.constant 0 : i32
    %c0_i32_1 = arith.constant 0 : i32
    return %arg0, %c0_i32, %c0_i32_0 : i32, i32, i32
  }
  func.func @transform_3(%arg0: i32, %arg1: i32) -> (i32, i32) {
    %c0_i32 = arith.constant 0 : i32
    %c0_i32_0 = arith.constant 0 : i32
    %c0_i32_1 = arith.constant 0 : i32
    return %c0_i32, %c0_i32_0 : i32, i32
  }
  func.func @transform_4(%arg0: i32, %arg1: i32) -> (i32, i32) {
    %c0_i32 = arith.constant 0 : i32
    %c0_i32_0 = arith.constant 0 : i32
    %c0_i32_1 = arith.constant 0 : i32
    return %c0_i32, %c0_i32_0 : i32, i32
  }
  func.func @transform_5(%arg0: i32, %arg1: i32) -> (i32, i32, i32) {
    %c0_i32 = arith.constant 0 : i32
    %c0_i32_0 = arith.constant 0 : i32
    return %arg0, %arg1, %c0_i32 : i32, i32, i32
  }
}

</mosaic_0001>

<bundles_post_ra>
// kernel: tpu_custom_call.1
= control target key start
LH: loop header
LB: loop body
LE: loop exit
PB: predicated region body
PF: predicated region fallthrough
CT: control target
= control target key end

     0   :  { %s2259_s0 = inlined_call_operand.hbm [shape: f32[2,16,64], index: 0, kind: input, shape index: {}]   ;;  %s2260_s1 = inlined_call_operand.hbm [shape: f32[2,16,64], index: 1, kind: input, shape index: {}]   ;;  %s2261_s2 = inlined_call_operand.hbm [shape: f32[2,16,32], index: 2, kind: input, shape index: {}]   ;;  %s2262_s3 = inlined_call_operand.hbm [shape: f32[8,64], index: 3, kind: input, shape index: {}]   ;;  %s2263_s4 = inlined_call_operand.hbm [shape: f32[5,32], index: 4, kind: input, shape index: {}]   ;;  %s2264_s5 = inlined_call_operand.hbm [shape: f32[2,16,32], index: 5, kind: output, shape index: {}]  }
   0x1   :  { %2272 = sst [smem:[#allocation25_spill]] %s2260_s1 }
   0x2   :  { %2273 = sst [smem:[#allocation26_spill]] %s2262_s3 }
   0x3   :  { %2274 = sst [smem:[#allocation27_spill]] %s2263_s4 }
   0x4   :  { %10 = vsyncpa [#allocation6], 0 }
   0x5   :  { %12 = vsyncpa [#allocation6 + $0x1], 0 }
   0x6   :  { %13 = vsyncpa [#allocation9], 0 }
   0x7   :  { %15 = vsyncpa [#allocation9 + $0x1], 0 }
   0x8   :  { %16 = vsyncpa [#allocation12], 0 }
   0x9   :  { %17 = vsyncpa [#allocation7], 0 }
   0xa   :  { %19 = vsyncpa [#allocation7 + $0x1], 0  ;;  %s1882_s18 = smov 0   ;;  %s1884_s19 = smov 0  }
   0xb   :  { %s1886_s20 = smov 0   ;;  %s1888_s21 = smov 0  }
   0xc   :  { %s1890_s22 = smov 0   ;;  %s1892_s23 = smov 0  }
   0xd LB: > { %2275 = sst [smem:[#allocation19_spill]] %s1817_s18  ;;  %s1913_s24 = sadd.s32 4294967295, %s1837_s23   ;;  %s1837_s23 = sphi %s1892_s23, %s25_s23   ;;  %s1833_s22 = sphi %s1890_s22, %s2297_s22   ;;  %s1829_s21 = sphi %s1888_s21, %s2296_s21   ;;  %s1825_s20 = sphi %s1886_s20, %s2300_s20   ;;  %s1821_s19 = sphi %s1884_s19, %s2299_s19   ;;  %s1817_s18 = sphi %s1882_s18, %s2298_s18  }
   0xe   : > { %2276 = sst [smem:[#allocation20_spill]] %s1833_s22  ;;  %s1310_s25 = sadd.s32 4294967294, %s1837_s23  }
   0xf   : > { %2277 = sst [smem:[#allocation21_spill]] %s1837_s23  ;;  %s46_s26 = sadd.s32 1, %s1825_s20 }
  0x10   : > { %p53_p0 = scmp.ne.s32.totalorder %s1825_s20, %s1821_s19  ;;  %p54_p1 = scmp.eq.s32.totalorder %s1837_s23, 0 }
  0x11   : > { %p59_p2 = scmp.ne.s32.totalorder %s1821_s19, %s1817_s18  ;;  %p60_p3 = scmp.eq.s32.totalorder %s1913_s24, 0 }
  0x12   : > { %p179_p4 = scmp.eq.s32.totalorder %s1913_s24, 1  ;;  %p1924_p5 = por %p54_p1, %p53_p0 }
  0x13   : > { %p185_p6 = scmp.eq.s32.totalorder %s1310_s25, 1  ;;  %p1930_p7 = por %p60_p3, %p59_p2 }
  0x14   : > { %p1934_p8 = por %p179_p4, %p53_p0  ;;  %p1311_p10 = scmp.ge.s32.totalorder %s1837_s23, 1 }
  0x15   : > { %p1938_p9 = por %p185_p6, %p59_p2  ;;  %p192_p11 = scmp.lt.s32.totalorder %s1837_s23, 3 }
  0x16   : > { %s2283_s3 = sld [smem:[#allocation26_spill]]  ;;  %s1839_s10 = smov [#allocation11]  }
  0x17   : > { %s2281_s30 = scalar_select %p1938_p9, 1, 0 }
  0x18   : > { %p1947_p12 = pnand %p1311_p10, %p192_p11  ;;  %s206_s11 = sshll.u32 %s1839_s10, 4  ;;  %s207_s11 = int_to_ptr.vmem [resolvable:$true] %s206_s11 }
  0x19   : > { %2282 = sst [smem:[#allocation22_spill]] %s2281_s30  ;;  %p1314_p13 = scmp.ge.s32.totalorder %s1837_s23, 2 }
  0x1a   : > { %p1448_p0 = pneg %p1947_p12  ;;  %p1471_p1 = scmp.lt.s32.totalorder %s1837_s23, 2 }
  0x1b   : > { %s37_s14 = sadd.s32 1, %s1833_s22  ;;  %s2265_s15 = sand.u32 1, %s1825_s20  }
  0x1c   : > { %s204_s8 = sshll.u32 %s2283_s3, 4  ;;  %p1957_p2 = pnand %p1448_p0, %p60_p3  ;;  %s205_s8 = int_to_ptr.hbm [resolvable:$true] %s204_s8 }
  0x1d   : > { %p1963_p4 = pnand %p1471_p1, %p1924_p5  ;;  %p39_p6 = scmp.ge.s32.totalorder %s37_s14, 2 }
  0x1e   : > { %1451 = dma.hbm_to_vmem [thread:$0]  (!%p1957_p2), %s205_s8, 128, %s207_s11, [#allocation12]  }
  0x1f   : > { %s2302_s14 = smov (%p39_p6, %s37_s14), 0  ;;  %s1975_s16 = sshll.u32 %s2265_s15, 4 }
  0x20   : > { %2287 = sst [smem:[#allocation23_spill]] %s2302_s14  ;;  %s1978_s17 = sshll.u32 %s1833_s22, 4 }
  0x21   : > { %s41_s25 = ssub.s32 %s1833_s22, %s2302_s14  ;;  %s253_s27 = sand.u32 1, %s1837_s23  }
  0x22   : > { %p44_p5 = scmp.eq.s32.totalorder %s41_s25, 0  ;;  %s2289_s1 = sld [smem:[#allocation25_spill]] }
  0x23   : > { %s257_s3 = scalar_lea.vmem [#allocation8], %s1975_s16  ;;  %s254_s30 = scalar_lea.sflag [#allocation9], %s253_s27 }
  0x24   : > { %s1986_s6 = scalar_select %p44_p5, %s1825_s20, %s46_s26  }
  0x25   : > { %s265_s15 = sshll.u32 %s257_s3, 4  ;;  %s1840_s14 = smov 128   ;;  %s266_s15 = int_to_ptr.vmem [resolvable:$true] %s265_s15 }
  0x26   : > { %2288 = sst [smem:[#allocation24_spill]] %s1986_s6  ;;  %s1841_s25 = smov 8  }
  0x27   : > { %s2290_s4 = sld [smem:[#allocation27_spill]]  ;;  %s1842_s8 = smov [#allocation13]  }
  0x28   : > { %s262_s10 = scalar_lea.hbm %s2289_s1, %s1978_s17  ;;  %s240_s1 = scalar_lea.hbm %s2259_s0, %s1978_s17 }
  0x29   : > { %s263_s11 = sshll.u32 %s262_s10, 4  ;;  %s218_s10 = sshll.u32 %s1842_s8, 4  ;;  %s264_s11 = int_to_ptr.hbm [resolvable:$true] %s263_s11  ;;  %s219_s10 = int_to_ptr.vmem [resolvable:$true] %s218_s10 }
  0x2a   : > { %1461 = dma.hbm_to_vmem [thread:$0]  (!%p1963_p4), %s264_s11, 256, %s266_s15, %s254_s30, %s1840_s14, %s1840_s14, %s1841_s25  }
  0x2b   : > { %s241_s6 = sshll.u32 %s240_s1, 4  ;;  %s233_s23 = scalar_lea.vmem [#allocation5], %s1975_s16  ;;  %s242_s6 = int_to_ptr.hbm [resolvable:$true] %s241_s6 }
  0x2c   : > { %s243_s18 = sshll.u32 %s233_s23, 4  ;;  %s2291_s15 = sand.u32 1, %s1825_s20   ;;  %s244_s18 = int_to_ptr.vmem [resolvable:$true] %s243_s18 }
  0x2d   : > { %s216_s7 = sshll.u32 %s2290_s4, 4  ;;  %s230_s22 = scalar_lea.sflag [#allocation6], %s2291_s15  ;;  %s217_s7 = int_to_ptr.hbm [resolvable:$true] %s216_s7 }
  0x2e   : > { %1454 = dma.hbm_to_vmem [thread:$0]  (!%p1957_p2), %s217_s7, 128, %s219_s10, [#allocation12]  }
  0x2f   : > { %1458 = dma.hbm_to_vmem [thread:$0]  (!%p1963_p4), %s242_s6, 256, %s244_s18, %s230_s22, %s1840_s14, %s1840_s14, %s1841_s25  }
  0x30   : > { %s284_s8 = scalar_lea.hbm %s2261_s2, %s1978_s17  ;;  %s279_s4 = scalar_lea.vmem [#allocation10], %s1975_s16 }
  0x31   : > { %s285_s12 = sshll.u32 %s284_s8, 4  ;;  %s287_s7 = sshll.u32 %s279_s4, 4  ;;  %s286_s12 = int_to_ptr.hbm [resolvable:$true] %s285_s12  ;;  %s288_s7 = int_to_ptr.vmem [resolvable:$true] %s287_s7 }
  0x32   : > { %1464 = dma.hbm_to_vmem [thread:$0]  (!%p1963_p4), %s286_s12, 256, %s288_s7, %s254_s30, %s1840_s14, %s1840_s14, %s1841_s25  }
  0x33   : > { %299 = sbr.rel (%p1947_p12) target bundleno = 1797 (0x705), region = 40  ;;  %s2019_s1 = sand.u32 (!%p1947_p12), 1, %s1821_s19  }
  0x34   : > { %s2022_s18 = sshll.u32 (!%p1947_p12), %s2019_s1, 4  ;;  %s302_s23 = scalar_lea.sflag (!%p1947_p12), [#allocation6], %s2019_s1 }
  0x35   : > { %s305_s17 = scalar_lea.vmem (!%p1947_p12), [#allocation5], %s2022_s18 }
  0x38   : > { %1800 = dma.done.wait (%p1930_p7), %s302_s23, 256  }
  0x39   : > { %1802 = vsyncadd (%p1930_p7), %s302_s23, 4294967040  ;;  %s311_s4 = sand.u32 1, %s1913_s24   ;;  %s315_s9 = scalar_lea.vmem [#allocation8], %s2022_s18 }
  0x3a   : > { %s312_s30 = scalar_lea.sflag [#allocation9], %s311_s4 }
  0x3b   : > { %1804 = dma.done.wait (%p1930_p7), %s312_s30, 512  }
  0x3c   : > { %1806 = vsyncadd (%p1930_p7), %s312_s30, 4294966784  ;;  %s325_s13 = scalar_lea.vmem [#allocation10], %s2022_s18 }
  0x3d   : > { %1808 = dma.done.wait (%p60_p3), [#allocation12], 256  }
  0x3e   : > { %1810 = vsyncadd (%p60_p3), [#allocation12], 4294967040  ;;  %v380_v0 = vld [vmem:[%s315_s9] sm:$0xff]  ;;  %v381_v1 = vld [vmem:[%s315_s9 + $0x8] sm:$0xff]  ;;  %vm394_vm0 = vcmask 519168   ;;  %vm469_vm1 = vcmask 130048  }
  0x3f   : > { %v1536_v2 = vld [vmem:[#allocation11 + $0x6] ss:$0 sm:$0xff]  ;;  %v1537_v3 = vld [vmem:[#allocation11 + $0x7] ss:$0 sm:$0xff]  ;;  %v436_v7 = vld [vmem:[%s305_s17 + $0x8] sm:$0xff]  ;;  %s1843_s24 = smov 112  }
  0x40   : > { %v435_v4 = vld [vmem:[%s305_s17] sm:$0xff]  ;;  %v399_v5 = vmul.f32 %v1536_v2, %v380_v0  ;;  %v400_v6 = vmul.f32 %v1536_v2, %v381_v1  ;;  %s1844_s28 = smov 16   ;;  %s1845_s14 = smov 96   ;;  %vm420_vm2 = vcmask 257024   ;;  %vm600_vm3 = vcmask 261120  }
  0x41   : > { %v1538_v8 = vld [vmem:[#allocation11 + $0x2] ss:$0 sm:$0xff]  ;;  %v1540_v9 = vld [vmem:[#allocation11 + $0x4] ss:$0 sm:$0xff]  ;;  %v1539_v12 = vld [vmem:[#allocation11 + $0x3] ss:$0 sm:$0xff] }
  0x42   : > { %v403_v10 = vadd.f32 %v1537_v3, %v399_v5  ;;  %v404_v11 = vadd.f32 %v1537_v3, %v400_v6  ;;  %v1541_v13 = vld [vmem:[#allocation11 + $0x5] ss:$0 sm:$0xff]  ;;  %v386_v14 = vmul.f32 %v1540_v9, %v380_v0  ;;  %v387_v15 = vmul.f32 %v1540_v9, %v381_v1  ;;  %v1542_v16 = vld [vmem:[#allocation11] ss:$0 sm:$0xff]  ;;  %v1543_v27 = vld [vmem:[#allocation11 + $0x1] ss:$0 sm:$0xff] }
  0x43   : > { %v449_v19 = vmul.f32 %v1538_v8, %v435_v4  ;;  %v450_v20 = vmul.f32 %v1538_v8, %v436_v7  ;;  %v439_v25 = vmul.f32 %v1542_v16, %v435_v4  ;;  %v440_v26 = vmul.f32 %v1542_v16, %v436_v7  ;;  %s1846_s16 = smov 80   ;;  %s1847_s6 = smov 120  }
  0x44   : > { %v405_v17 = vpack.c.bf16 %v403_v10, %v403_v10  ;;  %v406_v18 = vpack.c.bf16 %v404_v11, %v404_v11  ;;  %v390_v21 = vadd.f32 %v1541_v13, %v386_v14  ;;  %v391_v22 = vadd.f32 %v1541_v13, %v387_v15  ;;  %s1848_s25 = smov 104   ;;  %s1849_s10 = smov 8  }
  0x45   : > { %v453_v28 = vadd.f32 %v1539_v12, %v449_v19  ;;  %v454_v29 = vadd.f32 %v1539_v12, %v450_v20  ;;  %v443_v30 = vadd.f32 %v1543_v27, %v439_v25  ;;  %v444_v31 = vadd.f32 %v1543_v27, %v440_v26  ;;  %s1850_s3 = smov 24   ;;  %s1431_s27 = sshll.u32 %s1829_s21, 4 }
  0x46   : > { %408 = vst.msk [vmem:[#allocation2 + $0x8] sm:$0xf] %vm394_vm0, %v405_v17  ;;  %v392_v23 = vpack.c.bf16 %v390_v21, %v390_v21  ;;  %v393_v24 = vpack.c.bf16 %v391_v22, %v391_v22  ;;  %vm618_vm4 = vcmask 64512   ;;  %vm789_vm5 = vcmask 130112   ;;  %s1156_s11 = scalar_lea.hbm %s2264_s5, %s1431_s27  ;;  %s372_s26 = scalar_lea.vmem [#allocation14], %s2022_s18 }
  0x47   : > { %409 = vst.msk [vmem:[#allocation2 + $0xc] sm:$0xf] %vm394_vm0, %v406_v18  ;;  %v455_v32 = vpack.c.bf16 %v453_v28, %v453_v28  ;;  %v456_v33 = vpack.c.bf16 %v454_v29, %v454_v29  ;;  %v445_v36 = vpack.c.bf16 %v443_v30, %v443_v30  ;;  %v446_v37 = vpack.c.bf16 %v444_v31, %v444_v31  ;;  %v1544_v28 = vld [vmem:[#allocation13 + $0x2] ss:$0 sm:$0xff]  ;;  %v382_v29 = vld [vmem:[%s325_s13] sm:$0xff]  ;;  %s1157_s8 = sshll.u32 %s372_s26, 4  ;;  %s1158_s8 = int_to_ptr.vmem [resolvable:$true] %s1157_s8 }
  0x48   : > { %395 = vst.msk [vmem:[#allocation2] sm:$0xf] %vm394_vm0, %v392_v23  ;;  %v383_v30 = vld [vmem:[%s325_s13 + $0x8] sm:$0xff]  ;;  %vm960_vm6 = vcmask 195712   ;;  %vm1131_vm7 = vcmask 261312   ;;  %s1159_s12 = sshll.u32 %s1156_s11, 4  ;;  %s1160_s12 = int_to_ptr.hbm [resolvable:$true] %s1159_s12 }
  0x49   : > { %396 = vst.msk [vmem:[#allocation2 + $0x4] sm:$0xf] %vm394_vm0, %v393_v24  ;;  %v495_v39 = vunpack.c.l.b16 %v455_v32  ;;  %v496_v40 = vunpack.c.l.b16 %v456_v33  ;;  %v461_v44 = vunpack.c.l.b16 %v445_v36  ;;  %v462_v45 = vunpack.c.l.b16 %v446_v37  ;;  %v1546_v37 = vld [vmem:[#allocation13] ss:$0 sm:$0xff]  ;;  %s1143_s21 = scalar_lea.sflag [#allocation7], %s2019_s1  ;;  %s1761_s7 = sshra.s32 %s1160_s12, 4  ;;  %s1762_s7 = int_to_ptr.hbm [resolvable:$true] %s1761_s7 }
  0x4a   : > { %v425_v32 = vmul.f32 %v1544_v28, %v382_v29  ;;  %v426_v33 = vmul.f32 %v1544_v28, %v383_v30  ;;  %s1763_s23 = scalar_lea.hbm %s1762_s7, 16  ;;  %s1767_s4 = scalar_lea.hbm %s2264_s5, 32 }
  0x4b   : > { %v2049_v46 = vpack.c.b16 %v496_v40, %v495_v39  ;;  %v2051_v47 = vpack.c.b16 %v462_v45, %v461_v44  ;;  %p1764_p3 = scmp.ne.s32.totalorder %s1762_s7, %s1763_s23  ;;  %p1768_p11 = scmp.lt.s32.totalorder %s1762_s7, %s2264_s5 }
  0x4c   : > { %p1769_p12 = scmp.lt.s32.totalorder %s1767_s4, %s1763_s23 }
  0x4d   : > { %p1765_p7 = pnand %p1764_p3, %p1934_p8 }
  0x4e   : > { %v1420_v34 = vld [vmem:[#allocation2 + $0x8] sm:$0xff]  ;;  %p1770_p0 = por %p1769_p12, %p1768_p11 }
  0x4f   : > { %v1416_v35 = vld [vmem:[#allocation2 + $0x8] sm:$0xff]  ;;  %661 = vrot.lane.b32.xlu0 %v1420_v34, %s1843_s24  ;;  %v1545_v34 = vld [vmem:[#allocation13 + $0x3] ss:$0 sm:$0xff]  ;;  %p1766_p10 = pneg %p1765_p7 }
  0x50   : > { %v507_v38 = vsel %vm469_vm1, %v1416_v35, 0  ;;  %v1419_v41 = vld [vmem:[#allocation2] sm:$0xff]  ;;  %v1428_v11 = vld [vmem:[#allocation2 + $0x8] sm:$0xff]  ;;  %v429_v35 = vadd.f32 %v1545_v34, %v425_v32  ;;  %v430_v36 = vadd.f32 %v1545_v34, %v426_v33 }
  0x51   : > { %516 = vmatpush.bf16.xpose.msra.mxu1 %v507_v38  ;;  %v1415_v42 = vld [vmem:[#allocation2] sm:$0xff]  ;;  %630 = vrot.lane.b32.xlu1 %v1419_v41, %s1843_s24  ;;  %v1424_v23 = vld [vmem:[#allocation2 + $0x8] sm:$0xff]  ;;  %v412_v41 = vmul.f32 %v1546_v37, %v382_v29  ;;  %p1771_p1 = pnand %p1770_p0, %p1766_p10 }
  0x52   : > { %v474_v43 = vsel %vm469_vm1, %v1415_v42, 0  ;;  %v1423_v7 = vld [vmem:[#allocation2] sm:$0xff]  ;;  %v431_v39 = vpack.c.bf16 %v429_v35, %v429_v35  ;;  %v432_v40 = vpack.c.bf16 %v430_v36, %v430_v36  ;;  %v413_v42 = vmul.f32 %v1546_v37, %v383_v30 }
  0x53   : > { %483 = vmatpush.bf16.xpose.msra.mxu0 %v474_v43  ;;  %v1547_v43 = vld [vmem:[#allocation13 + $0x1] ss:$0 sm:$0xff] }
  0x54   : > { %433 = vst.msk [vmem:[#allocation3 + $0x8] sm:$0xf] %vm420_vm2, %v431_v39  ;;  %v416_v44 = vadd.f32 %v1547_v43, %v412_v41  ;;  %v417_v45 = vadd.f32 %v1547_v43, %v413_v42 }
  0x55   : > { %434 = vst.msk [vmem:[#allocation3 + $0xc] sm:$0xf] %vm420_vm2, %v432_v40 }
  0x57   : > { %654 = vrot.lane.b32.xlu0 %v2049_v46, %s1843_s24 }
  0x58   : > { %1340 = vmatmul.msk.bf16.vlgmr.msra.gmra.mxu1 %vm469_vm1, %v2049_v46 }
  0x59   : > { %623 = vrot.lane.b32.xlu1 %v2051_v47, %s1843_s24 }
  0x5a   : > { %1335 = vmatmul.msk.bf16.vlgmr.msra.gmra.mxu0 %vm469_vm1, %v2051_v47 }
  0xc1   : > { %v662_v48 = vpop.permute.xlu0 %661 }
  0xc2   : > { %v667_v49 = vsel %vm469_vm1, %v662_v48, 0  ;;  %v418_v48 = vpack.c.bf16 %v416_v44, %v416_v44 }
  0xc3   : > { %676 = vmatpush.bf16.xpose.msrb.mxu0 %v667_v49  ;;  %v631_v50 = vpop.permute.xlu1 %630  ;;  %v419_v49 = vpack.c.bf16 %v417_v45, %v417_v45 }
  0xc4   : > { %v636_v51 = vsel %vm469_vm1, %v631_v50, 0  ;;  %421 = vst.msk [vmem:[#allocation3] sm:$0xf] %vm420_vm2, %v418_v48  ;;  %v1418_v50 = vld [vmem:[#allocation3 + $0x8] sm:$0xff] }
  0xc5   : > { %645 = vmatpush.bf16.xpose.msra.mxu3 %v636_v51  ;;  %422 = vst.msk [vmem:[#allocation3 + $0x4] sm:$0xf] %vm420_vm2, %v419_v49  ;;  %610 = vmatpush.bf16.msra.mxu2 %v1418_v50 }
  0xc9   : > { %v655_v52 = vpop.permute.xlu0 %654 }
  0xca   : > { %1359 = vmatmul.msk.bf16.vlgmr.msrb.gmra.mxu0 %vm469_vm1, %v655_v52 }
  0xcb   : > { %v624_v53 = vpop.permute.xlu1 %623 }
  0xcc   : > { %1354 = vmatmul.msk.bf16.vlgmr.msra.gmra.mxu3 %vm469_vm1, %v624_v53  ;;  %v1417_v52 = vld [vmem:[#allocation3] sm:$0xff] }
  0xcd   : > { %611 = vmatpush.bf16.msra.mxu2 %v1417_v52 }
  0xd5   : > { %v518_v54 = vpop.f32.mrf.mxu1 }
  0xd6   : > { %v529_v55 = vsel %vm469_vm1, %v518_v54, -inf }
  0xd7   : > { %530 = vmax.xlane.f32.xlu2 %v529_v55  ;;  %v485_v56 = vpop.f32.mrf.mxu0 }
  0xd8   : > { %v523_v57 = vsel %vm469_vm1, %v485_v56, -inf }
  0xd9   : > { %524 = vmax.xlane.f32.xlu0 %v523_v57 }
  0xdd   : > { %v520_v58 = vpop.f32.mrf.mxu1 }
  0xde   : > { %v532_v59 = vsel %vm469_vm1, %v520_v58, -inf }
  0xdf   : > { %533 = vmax.xlane.f32.xlu2 %v532_v59  ;;  %v487_v60 = vpop.f32.mrf.mxu0 }
  0xe0   : > { %v526_v61 = vsel %vm469_vm1, %v487_v60, -inf }
  0xe1   : > { %527 = vmax.xlane.f32.xlu1 %v526_v61 }
 0x147   : > { %v678_v62 = vpop.f32.mrf.mxu0 }
 0x148   : > { %v689_v8 = vsel %vm469_vm1, %v678_v62, -inf }
 0x14a   : > { %v531_v63 = vpop.xlane.xlu2 %530 }
 0x14b   : > { %v537_v0 = vsub.f32 %v518_v54, %v531_v63 }
 0x14c   : > { %v525_v12 = vpop.xlane.xlu0 %524 }
 0x14d   : > { %541 = vrot.lane.b32.xlu2 %v537_v0, %s1844_s28  ;;  %v535_v13 = vsub.f32 %v485_v56, %v525_v12  ;;  %v1422_v12 = vld [vmem:[#allocation3 + $0x8] sm:$0xff] }
 0x14f   : > { %v680_v1 = vpop.f32.mrf.mxu0  ;;  %v2071_v3 = vpop.f32.mrf.mxu3 }
 0x150   : > { %v692_v2 = vsel %vm469_vm1, %v680_v1, -inf  ;;  %v683_v5 = vsel %vm469_vm1, %v2071_v3, -inf }
 0x151   : > { %693 = vmax.xlane.f32.xlu0 %v692_v2  ;;  %684 = vmax.xlane.f32.xlu1 %v683_v5 }
 0x152   : > { %v534_v4 = vpop.xlane.xlu2 %533 }
 0x153   : > { %v538_v6 = vsub.f32 %v520_v58, %v534_v4 }
 0x154   : > { %v528_v17 = vpop.xlane.xlu1 %527 }
 0x155   : > { %543 = vrot.lane.b32.xlu2 %v538_v6, %s1844_s28  ;;  %v536_v18 = vsub.f32 %v487_v60, %v528_v17 }
 0x157   : > { %v2078_v9 = vpop.f32.mrf.mxu3 }
 0x158   : > { %v686_v10 = vsel %vm469_vm1, %v2078_v9, -inf }
 0x165   : > { %801 = vrot.lane.b32.xlu0 %v1423_v7, %s1845_s14 }
 0x17e   : > { %690 = vmax.xlane.f32.xlu2 %v689_v8 }
 0x18f   : > { %687 = vmax.xlane.f32.xlu0 %v686_v10 }
 0x1a3   : > { %1003 = vrot.lane.b32.xlu0 %v1428_v11, %s1846_s16 }
 0x1a7   : > { %v542_v14 = vpop.permute.xlu2 %541 }
 0x1a8   : > { %v547_v15 = vsel %vm469_vm1, %v535_v13, %v542_v14 }
 0x1a9   : > { %v549_v16 = vmul.f32 1.442695, %v547_v15 }
 0x1ab   : > { %1549 = vpow2.f32 %v549_v16 }
 0x1af   : > { %v544_v19 = vpop.permute.xlu2 %543 }
 0x1b0   : > { %v548_v20 = vsel %vm469_vm1, %v536_v18, %v544_v19  ;;  %v1427_v19 = vld [vmem:[#allocation2] sm:$0xff] }
 0x1b1   : > { %v2085_v21 = vpop.eup %1549  ;;  %v551_v22 = vmul.f32 1.442695, %v548_v20 }
 0x1b2   : > { %563 = vrot.lane.b32.xlu1 %v2085_v21, %s1843_s24  ;;  %v553_v54 = vsel %vm469_vm1, %v2085_v21, 0.0 }
 0x1b3   : > { %1551 = vpow2.f32 %v551_v22 }
 0x1b9   : > { %v2089_v24 = vpop.eup %1551 }
 0x1ba   : > { %832 = vrot.lane.b32.xlu1 %v1424_v23, %s1845_s14  ;;  %565 = vrot.lane.b32.xlu0 %v2089_v24, %s1843_s24  ;;  %v556_v25 = vsel %vm469_vm1, %v2089_v24, 0.0 }
 0x1c4   : > { %v694_v31 = vpop.xlane.xlu0 %693  ;;  %v685_v55 = vpop.xlane.xlu1 %684 }
 0x1c5   : > { %v698_v38 = vsub.f32 %v680_v1, %v694_v31  ;;  %v695_v59 = vsub.f32 %v2071_v3, %v685_v55 }
 0x1d7   : > { %v802_v51 = vpop.permute.xlu0 %801 }
 0x1d8   : > { %v807_v53 = vsel %vm469_vm1, %v802_v51, 0 }
 0x1d9   : > { %816 = vmatpush.bf16.xpose.msrb.mxu2 %v807_v53 }
 0x1e4   : > { %557 = vadd.xlane.f32.xlu1 %v556_v25 }
 0x1f1   : > { %v691_v26 = vpop.xlane.xlu2 %690 }
 0x1f2   : > { %v697_v27 = vsub.f32 %v678_v62, %v691_v26 }
 0x1f4   : > { %701 = vrot.lane.b32.xlu2 %v697_v27, %s1844_s28 }
 0x1fc   : > { %703 = vrot.lane.b32.xlu2 %v698_v38, %s1844_s28 }
 0x1fd   : > { %825 = vrot.lane.b32.xlu1 %v2049_v46, %s1845_s14 }
 0x202   : > { %v688_v63 = vpop.xlane.xlu0 %687 }
 0x203   : > { %v696_v0 = vsub.f32 %v2078_v9, %v688_v63 }
 0x215   : > { %v1004_v8 = vpop.permute.xlu0 %1003 }
 0x216   : > { %v1009_v36 = vsel %vm469_vm1, %v1004_v8, 0 }
 0x224   : > { %v564_v56 = vpop.permute.xlu1 %563 }
 0x225   : > { %554 = vadd.xlane.f32.xlu2 %v553_v54  ;;  %v569_v9 = vsel %vm469_vm1, %v564_v56, 0.0 }
 0x22c   : > { %v833_v57 = vpop.permute.xlu1 %832  ;;  %v566_v10 = vpop.permute.xlu0 %565 }
 0x22d   : > { %v838_v58 = vsel %vm469_vm1, %v833_v57, 0  ;;  %v572_v11 = vsel %vm469_vm1, %v566_v10, 0.0 }
 0x22e   : > { %847 = vmatpush.bf16.xpose.msrb.mxu3 %v838_v58 }
 0x23d   : > { %794 = vrot.lane.b32.xlu2 %v2051_v47, %s1845_s14 }
 0x24e   : > { %v702_v60 = vpop.permute.xlu2 %701 }
 0x24f   : > { %v707_v61 = vsel %vm469_vm1, %v695_v59, %v702_v60 }
 0x250   : > { %v709_v62 = vmul.f32 1.442695, %v707_v61 }
 0x252   : > { %1553 = vpow2.f32 %v709_v62 }
 0x256   : > { %v704_v1 = vpop.permute.xlu2 %703 }
 0x257   : > { %v708_v2 = vsel %vm469_vm1, %v696_v0, %v704_v1  ;;  %v558_v3 = vpop.xlane.xlu1 %557 }
 0x258   : > { %v2114_v4 = vpop.eup %1553  ;;  %v711_v5 = vmul.f32 1.442695, %v708_v2 }
 0x259   : > { %723 = vrot.lane.b32.xlu0 %v2114_v4, %s1843_s24  ;;  %v713_v13 = vsel %vm469_vm1, %v2114_v4, 0.0 }
 0x25a   : > { %1555 = vpow2.f32 %v711_v5 }
 0x260   : > { %v2118_v6 = vpop.eup %1555 }
 0x261   : > { %725 = vrot.lane.b32.xlu1 %v2118_v6, %s1843_s24  ;;  %v716_v16 = vsel %vm469_vm1, %v2118_v6, 0.0 }
 0x26f   : > { %v826_v7 = vpop.permute.xlu1 %825 }
 0x270   : > { %1378 = vmatmul.msk.bf16.vlgmr.msrb.gmra.mxu3 %vm469_vm1, %v826_v7 }
 0x283   : > { %570 = vadd.xlane.f32.xlu0 %v569_v9 }
 0x28b   : > { %573 = vadd.xlane.f32.xlu1 %v572_v11 }
 0x297   : > { %996 = vrot.lane.b32.xlu0 %v2049_v46, %s1846_s16  ;;  %v1421_v46 = vld [vmem:[#allocation3] sm:$0xff] }
 0x298   : > { %v555_v22 = vpop.xlane.xlu2 %554 }
 0x2a0   : > { %v795_v39 = vpop.permute.xlu2 %794 }
 0x2a4   : > { %760 = vrot.lane.b32.xlu1 %v1422_v12, %s1847_s6 }
 0x2c1   : > { %714 = vadd.xlane.f32.xlu0 %v713_v13 }
 0x2cb   : > { %v724_v14 = vpop.permute.xlu0 %723 }
 0x2cc   : > { %v729_v15 = vsel %vm469_vm1, %v724_v14, 0.0 }
 0x2cd   : > { %730 = vadd.xlane.f32.xlu2 %v729_v15 }
 0x2ce   : > { %717 = vadd.xlane.f32.xlu1 %v716_v16 }
 0x2d3   : > { %v726_v17 = vpop.permute.xlu1 %725 }
 0x2d4   : > { %v732_v18 = vsel %vm469_vm1, %v726_v17, 0.0 }
 0x2d5   : > { %733 = vadd.xlane.f32.xlu0 %v732_v18 }
 0x2e5   : > { %758 = vrot.lane.b32.xlu2 %v1421_v46, %s1847_s6 }
 0x2e7   : > { %965 = vrot.lane.b32.xlu1 %v2051_v47, %s1846_s16 }
 0x2e9   : > { %972 = vrot.lane.b32.xlu0 %v1427_v19, %s1846_s16 }
 0x2f3   : > { %v849_v28 = vpop.f32.mrf.mxu3 }
 0x2f4   : > { %v860_v38 = vsel %vm469_vm1, %v849_v28, -inf }
 0x2f6   : > { %v571_v20 = vpop.xlane.xlu0 %570 }
 0x2f7   : > { %1557 = vrcp.f32 %v571_v20 }
 0x2f8   : > { %1559 = vrcp.f32 %v558_v3 }
 0x2f9   : > { %1561 = vrcp.f32 %v555_v22 }
 0x2fb   : > { %v2144_v37 = vpop.f32.mrf.mxu3 }
 0x2fd   : > { %v1558_v25 = vpop.eup %1557 }
 0x2fe   : > { %v574_v23 = vpop.xlane.xlu1 %573  ;;  %v1560_v26 = vpop.eup %1559  ;;  %v579_v29 = vmul.f32 %v1558_v25, %v2085_v21 }
 0x2ff   : > { %1563 = vrcp.f32 %v574_v23  ;;  %v1562_v27 = vpop.eup %1561  ;;  %v578_v31 = vmul.f32 %v1560_v26, %v2089_v24 }
 0x300   : > { %v577_v47 = vmul.f32 %v1562_v27, %v2085_v21  ;;  %v863_v21 = vsel %vm469_vm1, %v2144_v37, -inf }
 0x302   : > { %v581_v33 = vsel %vm469_vm1, %v577_v47, %v579_v29 }
 0x305   : > { %v1564_v30 = vpop.eup %1563 }
 0x306   : > { %v580_v32 = vmul.f32 %v1564_v30, %v2089_v24 }
 0x308   : > { %v582_v34 = vsel %vm469_vm1, %v578_v31, %v580_v32 }
 0x309   : > { %v583_v35 = vpack.c.bf16 %v582_v34, %v581_v33  ;;  %v997_v40 = vpop.permute.xlu0 %996 }
 0x30b   : > { %1349 = vmatmul.msk.bf16.vlgmr.msra.gmra.mxu2 %vm600_vm3, %v583_v35 }
 0x30c   : > { %1018 = vmatpush.bf16.xpose.msra.mxu2 %v1009_v36 }
 0x311   : > { %861 = vmax.xlane.f32.xlu1 %v860_v38 }
 0x313   : > { %864 = vmax.xlane.f32.xlu0 %v863_v21 }
 0x316   : > { %v761_v24 = vpop.permute.xlu1 %760 }
 0x317   : > { %773 = vmatpush.bf16.msrb.mxu1 %v761_v24  ;;  %v1430_v24 = vld [vmem:[#allocation3 + $0x8] sm:$0xff] }
 0x31b   : > { %1373 = vmatmul.msk.bf16.vlgmr.msrb.gmra.mxu2 %vm469_vm1, %v795_v39 }
 0x32b   : > { %1397 = vmatmul.msk.bf16.vlgmr.msra.gmra.mxu2 %vm469_vm1, %v997_v40 }
 0x334   : > { %v715_v41 = vpop.xlane.xlu0 %714 }
 0x340   : > { %v731_v42 = vpop.xlane.xlu2 %730 }
 0x341   : > { %v718_v43 = vpop.xlane.xlu1 %717  ;;  %1565 = vrcp.f32 %v731_v42 }
 0x342   : > { %1567 = vrcp.f32 %v715_v41 }
 0x343   : > { %1569 = vrcp.f32 %v718_v43 }
 0x347   : > { %v1566_v48 = vpop.eup %1565 }
 0x348   : > { %v734_v44 = vpop.xlane.xlu0 %733  ;;  %v759_v45 = vpop.permute.xlu2 %758  ;;  %v739_v51 = vmul.f32 %v1566_v48, %v2114_v4 }
 0x349   : > { %1571 = vrcp.f32 %v734_v44  ;;  %774 = vmatpush.bf16.msrb.mxu1 %v759_v45  ;;  %v1568_v49 = vpop.eup %1567 }
 0x34a   : > { %v1570_v50 = vpop.eup %1569  ;;  %v737_v53 = vmul.f32 %v1568_v49, %v2114_v4 }
 0x34b   : > { %v738_v54 = vmul.f32 %v1570_v50, %v2118_v6 }
 0x34c   : > { %v741_v56 = vsel %vm469_vm1, %v737_v53, %v739_v51 }
 0x34f   : > { %v1572_v52 = vpop.eup %1571 }
 0x350   : > { %v740_v55 = vmul.f32 %v1572_v52, %v2118_v6 }
 0x352   : > { %v742_v57 = vsel %vm469_vm1, %v738_v54, %v740_v55 }
 0x353   : > { %v743_v58 = vpack.c.bf16 %v742_v57, %v741_v56 }
 0x355   : > { %1368 = vmatmul.msk.bf16.vlgmr.msrb.gmra.mxu1 %vm600_vm3, %v743_v58 }
 0x359   : > { %v966_v61 = vpop.permute.xlu1 %965 }
 0x35b   : > { %v973_v59 = vpop.permute.xlu0 %972 }
 0x35c   : > { %v978_v60 = vsel %vm469_vm1, %v973_v59, 0  ;;  %v1429_v59 = vld [vmem:[#allocation3] sm:$0xff] }
 0x35d   : > { %987 = vmatpush.bf16.xpose.msra.mxu1 %v978_v60 }
 0x365   : > { %1392 = vmatmul.msk.bf16.vlgmr.msra.gmra.mxu1 %vm469_vm1, %v966_v61  ;;  %v1426_v61 = vld [vmem:[#allocation3 + $0x8] sm:$0xff] }
 0x384   : > { %v862_v62 = vpop.xlane.xlu1 %861 }
 0x385   : > { %v868_v63 = vsub.f32 %v849_v28, %v862_v62 }
 0x386   : > { %v865_v16 = vpop.xlane.xlu0 %864 }
 0x387   : > { %872 = vrot.lane.b32.xlu0 %v868_v63, %s1844_s28  ;;  %v869_v17 = vsub.f32 %v2144_v37, %v865_v16 }
 0x38e   : > { %v613_v0 = vpop.f32.mrf.mxu2 }
 0x38f   : > { %619 = vst.msk [vmem:[#allocation4] sm:$0xff] %vm618_vm4, %v613_v0 }
 0x396   : > { %v615_v1 = vpop.f32.mrf.mxu2 }
 0x397   : > { %620 = vst.msk [vmem:[#allocation4 + $0x8] sm:$0xff] %vm618_vm4, %v615_v1 }
 0x39e   : > { %v818_v2 = vpop.f32.mrf.mxu2 }
 0x39f   : > { %v854_v4 = vsel %vm469_vm1, %v818_v2, -inf }
 0x3a0   : > { %855 = vmax.xlane.f32.xlu1 %v854_v4 }
 0x3a6   : > { %v820_v5 = vpop.f32.mrf.mxu2 }
 0x3a7   : > { %v857_v6 = vsel %vm469_vm1, %v820_v5, -inf }
 0x3a8   : > { %858 = vmax.xlane.f32.xlu1 %v857_v6 }
 0x3ae   : > { %v1020_v3 = vpop.f32.mrf.mxu2 }
 0x3af   : > { %v1031_v7 = vsel %vm469_vm1, %v1020_v3, -inf }
 0x3b1   : > { %1032 = vmax.xlane.f32.xlu0 %v1031_v7 }
 0x3b6   : > { %v1022_v8 = vpop.f32.mrf.mxu2 }
 0x3b7   : > { %v1034_v9 = vsel %vm469_vm1, %v1022_v8, -inf }
 0x3b8   : > { %1035 = vmax.xlane.f32.xlu2 %v1034_v9 }
 0x3d2   : > { %v2165_v10 = vpop.f32.mrf.mxu1 }
 0x3da   : > { %v2167_v11 = vpop.f32.mrf.mxu1 }
 0x3e2   : > { %v989_v12 = vpop.f32.mrf.mxu1 }
 0x3e3   : > { %v1025_v13 = vsel %vm469_vm1, %v989_v12, -inf }
 0x3e4   : > { %1026 = vmax.xlane.f32.xlu2 %v1025_v13 }
 0x3ea   : > { %v991_v14 = vpop.f32.mrf.mxu1 }
 0x3eb   : > { %v1028_v15 = vsel %vm469_vm1, %v991_v14, -inf }
 0x3ec   : > { %1029 = vmax.xlane.f32.xlu1 %v1028_v15 }
 0x3f9   : > { %v873_v19 = vpop.permute.xlu0 %872 }
 0x405   : > { %874 = vrot.lane.b32.xlu1 %v869_v17, %s1844_s28 }
 0x413   : > { %v856_v18 = vpop.xlane.xlu1 %855 }
 0x414   : > { %v866_v46 = vsub.f32 %v818_v2, %v856_v18 }
 0x416   : > { %v878_v20 = vsel %vm469_vm1, %v866_v46, %v873_v19 }
 0x417   : > { %v880_v22 = vmul.f32 1.442695, %v878_v20 }
 0x419   : > { %1573 = vpow2.f32 %v880_v22 }
 0x41b   : > { %v859_v30 = vpop.xlane.xlu1 %858 }
 0x41c   : > { %v867_v32 = vsub.f32 %v820_v5, %v859_v30 }
 0x41f   : > { %v2174_v23 = vpop.eup %1573 }
 0x420   : > { %894 = vrot.lane.b32.xlu2 %v2174_v23, %s1843_s24  ;;  %v884_v25 = vsel %vm469_vm1, %v2174_v23, 0.0 }
 0x421   : > { %885 = vadd.xlane.f32.xlu0 %v884_v25 }
 0x424   : > { %v1033_v28 = vpop.xlane.xlu0 %1032 }
 0x425   : > { %v1039_v29 = vsub.f32 %v1020_v3, %v1033_v28 }
 0x42b   : > { %v1036_v26 = vpop.xlane.xlu2 %1035 }
 0x42c   : > { %v1040_v27 = vsub.f32 %v1022_v8, %v1036_v26 }
 0x42e   : > { %1045 = vrot.lane.b32.xlu2 %v1040_v27, %s1844_s28 }
 0x435   : > { %1043 = vrot.lane.b32.xlu0 %v1039_v29, %s1844_s28 }
 0x457   : > { %v1027_v47 = vpop.xlane.xlu2 %1026 }
 0x458   : > { %v1037_v40 = vsub.f32 %v989_v12, %v1027_v47 }
 0x45f   : > { %v1030_v31 = vpop.xlane.xlu1 %1029 }
 0x460   : > { %v1038_v52 = vsub.f32 %v991_v14, %v1030_v31  ;;  %v1425_v14 = vld [vmem:[#allocation3] sm:$0xff] }
 0x477   : > { %v875_v33 = vpop.permute.xlu1 %874 }
 0x478   : > { %v879_v34 = vsel %vm469_vm1, %v867_v32, %v875_v33 }
 0x479   : > { %v882_v35 = vmul.f32 1.442695, %v879_v34 }
 0x47a   : > { %v895_v36 = vpop.permute.xlu2 %894 }
 0x47b   : > { %1575 = vpow2.f32 %v882_v35  ;;  %v900_v37 = vsel %vm469_vm1, %v895_v36, 0.0 }
 0x47c   : > { %901 = vadd.xlane.f32.xlu1 %v900_v37 }
 0x481   : > { %v1576_v38 = vpop.eup %1575 }
 0x482   : > { %896 = vrot.lane.b32.xlu0 %v1576_v38, %s1843_s24  ;;  %v887_v21 = vsel %vm469_vm1, %v1576_v38, 0.0 }
 0x483   : > { %888 = vadd.xlane.f32.xlu2 %v887_v21 }
 0x488   : > { %v1046_v48 = vpop.permute.xlu2 %1045 }
 0x489   : > { %v1050_v53 = vsel %vm469_vm1, %v1038_v52, %v1046_v48 }
 0x48a   : > { %v1053_v55 = vmul.f32 1.442695, %v1050_v53 }
 0x494   : > { %v886_v39 = vpop.xlane.xlu0 %885 }
 0x49b   : > { %1102 = vrot.lane.b32.xlu2 %v1430_v24, %s1848_s25 }
 0x4a7   : > { %v1044_v41 = vpop.permute.xlu0 %1043 }
 0x4a8   : > { %v1049_v42 = vsel %vm469_vm1, %v1037_v40, %v1044_v41  ;;  %v1548_v40 = vld [vmem:[#allocation13 + $0x4] ss:$0 sm:$0xff] }
 0x4a9   : > { %v1051_v43 = vmul.f32 1.442695, %v1049_v42 }
 0x4ab   : > { %1577 = vpow2.f32 %v1051_v43 }
 0x4ac   : > { %1579 = vpow2.f32 %v1053_v55 }
 0x4b1   : > { %v2187_v44 = vpop.eup %1577 }
 0x4b2   : > { %1065 = vrot.lane.b32.xlu2 %v2187_v44, %s1843_s24  ;;  %v1055_v45 = vsel %vm469_vm1, %v2187_v44, 0.0  ;;  %v1580_v56 = vpop.eup %1579 }
 0x4b3   : > { %v1058_v60 = vsel %vm469_vm1, %v1580_v56, 0.0 }
 0x4db   : > { %1056 = vadd.xlane.f32.xlu2 %v1055_v45 }
 0x4ef   : > { %v902_v62 = vpop.xlane.xlu1 %901 }
 0x4f0   : > { %1581 = vrcp.f32 %v902_v62 }
 0x4f1   : > { %1583 = vrcp.f32 %v886_v39 }
 0x4f4   : > { %v897_v49 = vpop.permute.xlu0 %896 }
 0x4f5   : > { %v903_v50 = vsel %vm469_vm1, %v897_v49, 0.0 }
 0x4f6   : > { %904 = vadd.xlane.f32.xlu0 %v903_v50  ;;  %v889_v51 = vpop.xlane.xlu2 %888  ;;  %v1582_v0 = vpop.eup %1581 }
 0x4f7   : > { %1585 = vrcp.f32 %v889_v51  ;;  %v1584_v1 = vpop.eup %1583  ;;  %v910_v4 = vmul.f32 %v1582_v0, %v2174_v23 }
 0x4f8   : > { %v908_v6 = vmul.f32 %v1584_v1, %v2174_v23 }
 0x4fa   : > { %v912_v8 = vsel %vm469_vm1, %v908_v6, %v910_v4 }
 0x4fd   : > { %v1586_v2 = vpop.eup %1585 }
 0x4fe   : > { %v1103_v54 = vpop.permute.xlu2 %1102  ;;  %v909_v3 = vmul.f32 %v1586_v2, %v1576_v38 }
 0x4ff   : > { %1115 = vmatpush.bf16.msra.mxu3 %v1103_v54 }
 0x50a   : > { %1067 = vrot.lane.b32.xlu0 %v1580_v56, %s1843_s24 }
 0x50c   : > { %v1066_v57 = vpop.permute.xlu2 %1065 }
 0x50d   : > { %v1071_v58 = vsel %vm469_vm1, %v1066_v57, 0.0 }
 0x50e   : > { %1072 = vadd.xlane.f32.xlu1 %v1071_v58 }
 0x527   : > { %1100 = vrot.lane.b32.xlu1 %v1429_v59, %s1848_s25 }
 0x52f   : > { %785 = vrot.lane.b32.xlu1 %v2167_v11, %s1849_s10 }
 0x534   : > { %1059 = vadd.xlane.f32.xlu0 %v1058_v60 }
 0x548   : > { %931 = vrot.lane.b32.xlu0 %v1426_v61, %s1843_s24 }
 0x54e   : > { %v1057_v19 = vpop.xlane.xlu2 %1056 }
 0x550   : > { %783 = vrot.lane.b32.xlu0 %v2165_v10, %s1849_s10 }
 0x569   : > { %v905_v63 = vpop.xlane.xlu0 %904 }
 0x56a   : > { %1587 = vrcp.f32 %v905_v63 }
 0x570   : > { %v1588_v5 = vpop.eup %1587 }
 0x571   : > { %v911_v7 = vmul.f32 %v1588_v5, %v1576_v38 }
 0x573   : > { %v913_v9 = vsel %vm469_vm1, %v909_v3, %v911_v7 }
 0x574   : > { %v914_v10 = vpack.c.bf16 %v913_v9, %v912_v8 }
 0x57c   : > { %v1068_v11 = vpop.permute.xlu0 %1067 }
 0x57d   : > { %v1074_v12 = vsel %vm469_vm1, %v1068_v11, 0.0 }
 0x57e   : > { %1075 = vadd.xlane.f32.xlu2 %v1074_v12 }
 0x581   : > { %v1073_v13 = vpop.xlane.xlu1 %1072 }
 0x582   : > { %1589 = vrcp.f32 %v1073_v13 }
 0x583   : > { %1591 = vrcp.f32 %v1057_v19 }
 0x588   : > { %v1590_v22 = vpop.eup %1589 }
 0x589   : > { %v1592_v23 = vpop.eup %1591  ;;  %v1081_v26 = vmul.f32 %v1590_v22, %v2187_v44 }
 0x58a   : > { %v1079_v28 = vmul.f32 %v1592_v23, %v2187_v44 }
 0x58c   : > { %v1083_v47 = vsel %vm469_vm1, %v1079_v28, %v1081_v26 }
 0x596   : > { %929 = vrot.lane.b32.xlu2 %v1425_v14, %s1843_s24 }
 0x599   : > { %v1101_v15 = vpop.permute.xlu1 %1100 }
 0x59a   : > { %1116 = vmatpush.bf16.msra.mxu3 %v1101_v15 }
 0x5a1   : > { %v786_v16 = vpop.permute.xlu1 %785 }
 0x5a2   : > { %791 = vst.msk [vmem:[#allocation4 + $0x8] sm:$0xff] %vm789_vm5, %v786_v16 }
 0x5a7   : > { %v1060_v17 = vpop.xlane.xlu0 %1059 }
 0x5a8   : > { %1593 = vrcp.f32 %v1060_v17 }
 0x5ae   : > { %v1594_v25 = vpop.eup %1593 }
 0x5af   : > { %v1080_v29 = vmul.f32 %v1594_v25, %v1580_v56 }
 0x5ba   : > { %v932_v18 = vpop.permute.xlu0 %931 }
 0x5bb   : > { %944 = vmatpush.bf16.msra.mxu0 %v932_v18 }
 0x5c2   : > { %v784_v46 = vpop.permute.xlu0 %783 }
 0x5c3   : > { %790 = vst.msk [vmem:[#allocation4] sm:$0xff] %vm789_vm5, %v784_v46 }
 0x5f1   : > { %v1076_v20 = vpop.xlane.xlu2 %1075 }
 0x5f2   : > { %1595 = vrcp.f32 %v1076_v20 }
 0x5f8   : > { %v1596_v27 = vpop.eup %1595 }
 0x5f9   : > { %v1082_v30 = vmul.f32 %v1596_v27, %v1580_v56  ;;  %v930_v31 = vpop.permute.xlu2 %929 }
 0x5fa   : > { %945 = vmatpush.bf16.msra.mxu0 %v930_v31 }
 0x5fb   : > { %v1084_v32 = vsel %vm469_vm1, %v1080_v29, %v1082_v30 }
 0x5fc   : > { %v1085_v33 = vpack.c.bf16 %v1084_v32, %v1083_v47 }
 0x5fd   : > { %1387 = vmatmul.msk.bf16.vlgmr.msra.gmra.mxu0 %vm600_vm3, %v914_v10 }
 0x5fe   : > { %1406 = vmatmul.msk.bf16.vlgmr.msra.gmra.mxu3 %vm600_vm3, %v1085_v33 }
 0x67a   : > { %v947_v34 = vpop.f32.mrf.mxu0 }
 0x67b   : > { %954 = vrot.lane.b32.xlu2 %v947_v34, %s1844_s28 }
 0x681   : > { %v1118_v35 = vpop.f32.mrf.mxu3 }
 0x682   : > { %v949_v36 = vpop.f32.mrf.mxu0  ;;  %1125 = vrot.lane.b32.xlu1 %v1118_v35, %s1850_s3 }
 0x683   : > { %956 = vrot.lane.b32.xlu0 %v949_v36, %s1844_s28 }
 0x689   : > { %v1120_v37 = vpop.f32.mrf.mxu3 }
 0x68a   : > { %1127 = vrot.lane.b32.xlu2 %v1120_v37, %s1850_s3 }
 0x6d5   : > { %v955_v38 = vpop.permute.xlu2 %954 }
 0x6d6   : > { %961 = vst.msk [vmem:[#allocation4] sm:$0xff] %vm960_vm6, %v955_v38 }
 0x6e4   : > { %v1128_v39 = vpop.permute.xlu2 %1127 }
 0x6f4   : > { %v1126_v21 = vpop.permute.xlu1 %1125 }
 0x6f5   : > { %1132 = vst.msk [vmem:[#allocation4] sm:$0xff] %vm1131_vm7, %v1126_v21  ;;  %v957_v24 = vpop.permute.xlu0 %956 }
 0x6f6   : > { %962 = vst.msk [vmem:[#allocation4 + $0x8] sm:$0xff] %vm960_vm6, %v957_v24 }
 0x6f7   : > { %1133 = vst.msk [vmem:[#allocation4 + $0x8] sm:$0xff] %vm1131_vm7, %v1128_v39 }
 0x6fc   : > { %v1134_v41 = vld [vmem:[#allocation4] sm:$0xff] }
 0x6fd   : > { %v1138_v42 = vadd.f32 %v1548_v40, %v1134_v41 }
 0x6fe   : > { %v1135_v43 = vld [vmem:[#allocation4 + $0x8] sm:$0xff] }
 0x6ff   : > { %v1139_v44 = vadd.f32 %v1548_v40, %v1135_v43  ;;  %1140 = vst.msk [vmem:[%s372_s26] sm:$0xff] %vm600_vm3, %v1138_v42 }
 0x701   : > { %1141 = vst.msk [vmem:[%s372_s26 + $0x8] sm:$0xff] %vm600_vm3, %v1139_v44 }
 0x702   : > { %1774 = shalt.err (!%p1771_p1)
}
 0x703   : > { %s1851_s1 = smov 128  }
 0x704   : > { %1446 = dma.vmem_to_hbm [thread:$0]  (%p1934_p8), %s1158_s8, 256, %s1160_s12, %s1143_s21, %s1851_s1, %s1851_s1, %s1849_s10  }
 0x705 PF: > { %s2292_s13 = sld [smem:[#allocation19_spill]]  ;;  %p1466_p2 = pnand %p1314_p13, %p1938_p9 }
 0x706   : > { %s2294_s28 = sld [smem:[#allocation21_spill]] }
 0x707   : > { %p1467_p4 = pneg %p1466_p2 }
 0x70b   : > { %s1174_s14 = sand.u32 1, %s2292_s13  }
 0x70c   : > { %s1175_s16 = scalar_lea.sflag [#allocation7], %s1174_s14 }
 0x70d   : > { %1812 = dma.done.wait (%p1467_p4), %s1175_s16, 256  }
 0x70e   : > { %1814 = vsyncadd (%p1467_p4), %s1175_s16, 4294967040  ;;  %s25_s23 = sadd.s32 1, %s2294_s28   ;;  %s2295_s29 = sld [smem:[#allocation24_spill]] }
 0x70f   : > { %p22_p6 = scmp.ge.s32.totalorder %s25_s23, 4   ;;  %s2296_s21 = sld [smem:[#allocation20_spill]] }
 0x710   : > { %s2297_s22 = sld [smem:[#allocation23_spill]]  ;;  %s2298_s18 = smov %s1821_s19 }
 0x711   : > { %s2299_s19 = smov %s1825_s20  ;;  %24 = sbr.rel (!%p22_p6) target bundleno = 13 (0xd), region = 123 }
 0x714   : > { %s2300_s20 = smov %s2295_s29 }
 0x716   :  { %1181 = vsyncpa [#allocation6], 1 }
 0x717   :  { %1183 = vsyncpa [#allocation6 + $0x1], 1 }
 0x718   :  { %1184 = vsyncpa [#allocation9], 1 }
 0x719   :  { %1186 = vsyncpa [#allocation9 + $0x1], 1 }
 0x71a   :  { %1187 = vsyncpa [#allocation12], 1 }
 0x71b   :  { %1188 = vsyncpa [#allocation7], 1 }
 0x71c   :  { %1190 = vsyncpa [#allocation7 + $0x1], 1 }

</bundles_post_ra>
